<compile_context>
chip_gen: v7x
topology: tpu7x:2x2x1
jax: 0.10.0
libtpu: 0.0.40
codegen_flags: <defaults>
</compile_context>

<pallas_src>
import jax
import jax.numpy as jnp
from jax.experimental import pallas as pl
from jax.experimental.pallas import tpu as pltpu


def _scope_kernel(x_ref, w_ref, bias_ref, o_ref, x_scr):
    """Fused n x (Conv + folded-BN + GELU) for a block of B_blk samples.

    x_ref   : (B_blk, H, W*C)             bf16 input block, channel-fastest
    w_ref   : (KH*W*C, Wout*Cout)         bf16 folded conv weight (BN scale,
                                          KW taps, W halo, KH taps all in K)
    bias_ref: (1, Wout*Cout)              f32 folded BN bias tiled over W
    o_ref   : (B_blk, n, Hout, Wout*Cout) f32 per-iteration outputs, lane-dense
    x_scr   : (B_blk, Hp, W*C)            bf16 row-padded activation scratch
    """
    B_blk, n_iter, Hout, WoC = o_ref.shape
    H, WC = x_ref.shape[1], x_ref.shape[2]
    Hp = x_scr.shape[1]
    ph = (Hp - H) // 2                     # row padding
    KH = w_ref.shape[0] // WC
    M = B_blk * Hout

    # Zero only the row halo (the W halo is folded into zero weight entries).
    # Done every grid step: 2*ph rows is ~free and stays correct when the
    # "parallel" batch axis is sharded across TensorCores (per-core scratch).
    if ph > 0:
        halo = jnp.zeros((B_blk, ph, WC), x_scr.dtype)
        x_scr[:, :ph, :] = halo
        x_scr[:, Hp - ph:, :] = halo

    # Load the input block into the interior rows (bf16, 128-lane aligned).
    x_scr[:, ph:ph + H, :] = x_ref[...]

    w = w_ref[...]                                         # (KH*W*C, Wout*Cout)
    bias_b = jnp.broadcast_to(bias_ref[...], (M, WoC))     # hoisted out of loop
    c0 = 0.7978845608028654                                # sqrt(2/pi)

    for it in range(n_iter):                # n is small & static -> unrolled
        # One MXU matmul per iteration: KH row-shifted views concatenated along
        # the contraction axis (lane-aligned vreg copies, no retiling).
        lhs = jnp.concatenate(
            [x_scr[:, kh:kh + Hout, :] for kh in range(KH)], axis=-1)
        lhs = lhs.reshape(M, KH * WC)                       # (B_blk*Hout, K)
        acc = jnp.dot(lhs, w, preferred_element_type=jnp.float32)

        # Folded-BN bias + GELU (tanh approximation) in f32.
        y = acc + bias_b
        y = 0.5 * y * (1.0 + jnp.tanh(c0 * (y + 0.044715 * (y * y * y))))

        # Lane-dense (multiple-of-128) unmasked store of this iteration's slot.
        o_ref[:, it, :, :] = y.reshape(B_blk, Hout, WoC).astype(o_ref.dtype)

        # Feed the next iteration ("same" conv => same spatial size/channels);
        # single bf16 cast here replaces the old per-tap re-casts.
        if it + 1 < n_iter:
            x_scr[:, ph:ph + Hout, :] = (
                y.astype(x_scr.dtype).reshape(B_blk, Hout, WoC))


def _pick_batch_block(N, Hout, max_rows=256):
    """Largest divisor of N whose block keeps M = B_blk*Hout <= max_rows, while
    preserving >= 2 grid steps when possible (v7x has 2 TensorCores/chip)."""
    divs = [d for d in range(1, N + 1) if N % d == 0]
    fits = [d for d in divs if d * Hout <= max_rows] or [1]
    two_step = [d for d in fits if N // d >= 2]
    return max(two_step) if two_step else max(fits)


def scope_layer_forward(x_nchw, w_oihw, gamma, beta, *, n, stride, padding,
                        eps=1e-5, batch_block=None):
    """JAX/Pallas equivalent of Scope_layer.forward (NCHW in, NCHW out)."""
    N, Cin, H, W = x_nchw.shape
    Cout, Cin2, KH, KW = w_oihw.shape
    assert Cin2 == Cin
    assert stride == 1, "Scope_layer with n>1 requires stride=1"
    assert Cin == Cout, "shared CBG applied repeatedly requires Cin == Cout"
    assert 2 * padding == KH - 1 and 2 * padding == KW - 1, \
        "repeated application + channel concat requires a 'same' convolution"

    C = Cin
    Hout, Wout = H, W
    Hp = H + 2 * padding
    WC = W * C
    WoC = Wout * Cout
    K = KH * WC

    B_blk = batch_block if batch_block is not None else _pick_batch_block(N, Hout)
    assert N % B_blk == 0

    # Fold BatchNorm (running_mean=0, running_var=1) into scale/bias, then fold
    # the scale into the conv weights once (weights shared across all n apps).
    scale = gamma.astype(jnp.float32) / jnp.sqrt(1.0 + eps)
    bias = beta.astype(jnp.float32)

    # OIHW -> HWIO, per-output-channel BN scale folded in.
    w_hwio = jnp.transpose(w_oihw, (2, 3, 1, 0)).astype(jnp.float32)
    w_hwio = w_hwio * scale[None, None, None, :]

    # Folded weight (vectorized, no chained .at[].set()):
    #   wfold[(kh*W + wi)*C + ci, wo*Cout + co] = w_hwio[kh, kw, ci, co]
    # with kw = wi - wo + padding, zero where kw is out of range.  This folds
    # the KW taps, Cin, the W halo AND the KH taps into one contraction so the
    # activation lane dim is exactly W*C and the kernel does one matmul.
    wi = jnp.arange(W)
    wo = jnp.arange(Wout)
    kw_idx = wi[:, None] - wo[None, :] + padding                 # (W, Wout)
    valid = ((kw_idx >= 0) & (kw_idx < KW)).astype(jnp.float32)
    kw_safe = jnp.clip(kw_idx, 0, KW - 1)
    band = w_hwio[:, kw_safe] * valid[None, :, :, None, None]    # (KH,W,Wout,Ci,Co)
    band = jnp.transpose(band, (0, 1, 3, 2, 4))                  # (KH,W,Ci,Wout,Co)
    wfold = band.reshape(K, WoC).astype(jnp.bfloat16)

    # Bias tiled into the (Wout*Cout) lane layout: bias_tiled[w*Cout+co] = bias[co]
    bias_tiled = jnp.tile(bias, Wout).reshape(1, WoC)

    # NCHW -> channel-fastest (N, H, W*C), shipped as bf16 (halves input DMA).
    x_lay = jnp.transpose(x_nchw.astype(jnp.bfloat16), (0, 2, 3, 1))
    x_lay = x_lay.reshape(N, H, WC)

    out = pl.pallas_call(
        _scope_kernel,
        out_shape=jax.ShapeDtypeStruct((N, n, Hout, WoC), jnp.float32),
        grid_spec=pltpu.PrefetchScalarGridSpec(
            num_scalar_prefetch=0,
            grid=(N // B_blk,),
            in_specs=[
                pl.BlockSpec((B_blk, H, WC), lambda i: (i, 0, 0)),
                # Constant index_maps -> weight/bias stay VMEM-resident.
                pl.BlockSpec((K, WoC), lambda i: (0, 0)),
                pl.BlockSpec((1, WoC), lambda i: (0, 0)),
            ],
            out_specs=pl.BlockSpec((B_blk, n, Hout, WoC),
                                   lambda i: (i, 0, 0, 0)),
            scratch_shapes=[pltpu.VMEM((B_blk, Hp, WC), jnp.bfloat16)],
        ),
        compiler_params=pltpu.CompilerParams(
            dimension_semantics=("parallel",),
        ),
    )(x_lay, wfold, bias_tiled)

    # (N, n, Hout, Wout*Cout) -> (N, n*Cout, Hout, Wout): channel-concat order
    # matches torch.cat([out_1, out_2, ..., out_n], dim=1).
    # TODO(synk): consumers that accept the (N, n, H, W*Cout) layout (or bf16)
    # can skip this extra HBM pass.
    out = out.reshape(N, n, Hout, Wout, Cout)
    out = jnp.transpose(out, (0, 1, 4, 2, 3)).reshape(N, n * Cout, Hout, Wout)
    return out


def _reference(x_nchw, w_oihw, gamma, beta, *, n, stride, padding, eps=1e-5):
    """Pure-JAX reference of the assumed CBG semantics (folded BN, tanh-GELU)."""
    scale = gamma.astype(jnp.float32) / jnp.sqrt(1.0 + eps)
    bias = beta.astype(jnp.float32)

    def cbg(x):
        y = jax.lax.conv_general_dilated(
            x, w_oihw.astype(jnp.float32),
            window_strides=(stride, stride),
            padding=[(padding, padding), (padding, padding)],
            dimension_numbers=("NCHW", "OIHW", "NCHW"))
        y = y * scale[None, :, None, None] + bias[None, :, None, None]
        return jax.nn.gelu(y, approximate=True)

    outs = []
    cur = x_nchw.astype(jnp.float32)
    for _ in range(n):
        cur = cbg(cur)
        outs.append(cur)
    return jnp.concatenate(outs, axis=1)


if __name__ == "__main__":
    # Small, module-consistent configuration (shared CBG => Cin == Cout).
    # W*C = 128 -> lane-dense activations/outputs; N=8 lets batch blocking
    # raise the matmul M dim (B_blk=4 -> M=64) while keeping 2 grid steps.
    n = 3
    in_feature = out_feature = 8
    kernel_size, stride, padding = 3, 1, 1
    N, H, W = 8, 16, 16

    key = jax.random.PRNGKey(0)
    kx, kw, kg, kb = jax.random.split(key, 4)

    x = jax.random.normal(kx, (N, in_feature, H, W), jnp.float32)      # NCHW
    w = 0.1 * jax.random.normal(
        kw, (out_feature, in_feature, kernel_size, kernel_size), jnp.float32)
    gamma = 1.0 + 0.1 * jax.random.normal(kg, (out_feature,), jnp.float32)
    beta = 0.1 * jax.random.normal(kb, (out_feature,), jnp.float32)

    out = scope_layer_forward(x, w, gamma, beta,
                              n=n, stride=stride, padding=padding)
    out = jax.block_until_ready(out)

    assert out.shape == (N, n * out_feature, H, W), out.shape
    assert jnp.all(jnp.isfinite(out))

    # Correctness vs. pure-JAX reference (bf16 MXU path -> loose tolerance).
    ref = jax.block_until_ready(
        _reference(x, w, gamma, beta, n=n, stride=stride, padding=padding))
    max_err = float(jnp.max(jnp.abs(out - ref)))
    assert max_err < 0.1, f"max abs error vs reference too large: {max_err}"

    print("KERNEL_OK")
</pallas_src>

<mosaic_0001>
module attributes {stable_mosaic.version = 11 : i64} {
  func.func @_scope_kernel(%arg0: i32, %arg1: memref<4x16x128xbf16, #tpu.memory_space<vmem>>, %arg2: memref<384x128xbf16, #tpu.memory_space<vmem>>, %arg3: memref<1x128xf32, #tpu.memory_space<vmem>>, %arg4: memref<4x3x16x128xf32, #tpu.memory_space<vmem>>, %arg5: memref<4x18x128xbf16, #tpu.memory_space<vmem>>) attributes {dimension_semantics = [#tpu.dimension_semantics<parallel>], iteration_bounds = array<i64: 2>, scalar_prefetch = 0 : i64, scratch_operands = 1 : i64, tpu.core_type = #tpu.core_type<tc>, window_params = [{transform_indices = @transform_0, window_bounds = array<i64: 4, 16, 128>}, {pipeline_mode = #tpu.pipeline_mode<synchronous>, transform_indices = @transform_1, window_bounds = array<i64: 384, 128>}, {pipeline_mode = #tpu.pipeline_mode<synchronous>, transform_indices = @transform_2, window_bounds = array<i64: 1, 128>}, {transform_indices = @transform_3, window_bounds = array<i64: 4, 3, 16, 128>}]} {
    %cst = arith.constant 0.000000e+00 : bf16
    %0 = vector.broadcast %cst : bf16 to vector<4x1x128xbf16>
    %c0 = arith.constant 0 : index
    %c0_0 = arith.constant 0 : index
    %c0_1 = arith.constant 0 : index
    %1 = vector.load %arg5[%c0, %c0_0, %c0_1] : memref<4x18x128xbf16, #tpu.memory_space<vmem>>, vector<4x1x128xbf16>
    tpu.vector_store %arg5[%c0, %c0_0, %c0_1], %0 {strides = array<i32>} : memref<4x18x128xbf16, #tpu.memory_space<vmem>>, vector<4x1x128xbf16>,
    %c0_2 = arith.constant 0 : index
    %c17 = arith.constant 17 : index
    %c0_3 = arith.constant 0 : index
    %2 = vector.load %arg5[%c0_2, %c17, %c0_3] : memref<4x18x128xbf16, #tpu.memory_space<vmem>>, vector<4x1x128xbf16>
    tpu.vector_store %arg5[%c0_2, %c17, %c0_3], %0 {strides = array<i32>} : memref<4x18x128xbf16, #tpu.memory_space<vmem>>, vector<4x1x128xbf16>,
    %c0_4 = arith.constant 0 : index
    %c0_5 = arith.constant 0 : index
    %c0_6 = arith.constant 0 : index
    %3 = vector.load %arg1[%c0_4, %c0_5, %c0_6] : memref<4x16x128xbf16, #tpu.memory_space<vmem>>, vector<4x16x128xbf16>
    %c0_7 = arith.constant 0 : index
    %c1 = arith.constant 1 : index
    %c0_8 = arith.constant 0 : index
    %4 = vector.load %arg5[%c0_7, %c1, %c0_8] : memref<4x18x128xbf16, #tpu.memory_space<vmem>>, vector<4x16x128xbf16>
    tpu.vector_store %arg5[%c0_7, %c1, %c0_8], %3 {strides = array<i32>} : memref<4x18x128xbf16, #tpu.memory_space<vmem>>, vector<4x16x128xbf16>,
    %c0_9 = arith.constant 0 : index
    %c0_10 = arith.constant 0 : index
    %5 = vector.load %arg2[%c0_9, %c0_10] : memref<384x128xbf16, #tpu.memory_space<vmem>>, vector<384x128xbf16>
    %c0_11 = arith.constant 0 : index
    %c0_12 = arith.constant 0 : index
    %6 = vector.load %arg3[%c0_11, %c0_12] : memref<1x128xf32, #tpu.memory_space<vmem>>, vector<1x128xf32>
    %7 = vector.shape_cast %6 : vector<1x128xf32> to vector<1x128xf32>
    %8 = vector.broadcast %7 : vector<1x128xf32> to vector<64x128xf32>
    %c0_13 = arith.constant 0 : index
    %c0_14 = arith.constant 0 : index
    %c0_15 = arith.constant 0 : index
    %9 = vector.load %arg5[%c0_13, %c0_14, %c0_15] : memref<4x18x128xbf16, #tpu.memory_space<vmem>>, vector<4x16x128xbf16>
    %c0_16 = arith.constant 0 : index
    %c1_17 = arith.constant 1 : index
    %c0_18 = arith.constant 0 : index
    %10 = vector.load %arg5[%c0_16, %c1_17, %c0_18] : memref<4x18x128xbf16, #tpu.memory_space<vmem>>, vector<4x16x128xbf16>
    %c0_19 = arith.constant 0 : index
    %c2 = arith.constant 2 : index
    %c0_20 = arith.constant 0 : index
    %11 = vector.load %arg5[%c0_19, %c2, %c0_20] : memref<4x18x128xbf16, #tpu.memory_space<vmem>>, vector<4x16x128xbf16>
    %12 = tpu.concatenate %9, %10, %11 in 2 : vector<4x16x128xbf16>, vector<4x16x128xbf16>, vector<4x16x128xbf16> -> vector<4x16x384xbf16>
    %13 = vector.shape_cast %12 : vector<4x16x384xbf16> to vector<64x384xbf16>
    %cst_21 = arith.constant dense<0.000000e+00> : vector<64x128xf32>
    %14 = tpu.matmul %13, %5, %cst_21 {dimension_numbers = #tpu.dot_dimension_numbers<[1], [0], [0], [1], [0, 0, 1, 1], [], []>} : vector<64x384xbf16>, vector<384x128xbf16>, vector<64x128xf32> -> vector<64x128xf32>
    %15 = arith.addf %14, %8 : vector<64x128xf32>
    %cst_22 = arith.constant 5.000000e-01 : f32
    %16 = vector.broadcast %cst_22 : f32 to vector<64x128xf32>
    %17 = arith.mulf %16, %15 : vector<64x128xf32>
    %18 = arith.mulf %15, %15 : vector<64x128xf32>
    %19 = arith.mulf %18, %15 : vector<64x128xf32>
    %cst_23 = arith.constant 4.471500e-02 : f32
    %20 = vector.broadcast %cst_23 : f32 to vector<64x128xf32>
    %21 = arith.mulf %20, %19 : vector<64x128xf32>
    %22 = arith.addf %15, %21 : vector<64x128xf32>
    %cst_24 = arith.constant 0.797884583 : f32
    %23 = vector.broadcast %cst_24 : f32 to vector<64x128xf32>
    %24 = arith.mulf %23, %22 : vector<64x128xf32>
    %25 = math.tanh %24 : vector<64x128xf32>
    %cst_25 = arith.constant 1.000000e+00 : f32
    %26 = vector.broadcast %cst_25 : f32 to vector<64x128xf32>
    %27 = arith.addf %26, %25 : vector<64x128xf32>
    %28 = arith.mulf %17, %27 : vector<64x128xf32>
    %29 = vector.shape_cast %28 : vector<64x128xf32> to vector<4x16x128xf32>
    %c0_26 = arith.constant 0 : index
    %c0_27 = arith.constant 0 : index
    %c0_28 = arith.constant 0 : index
    %c0_29 = arith.constant 0 : index
    %30 = vector.load %arg4[%c0_26, %c0_27, %c0_28, %c0_29] : memref<4x3x16x128xf32, #tpu.memory_space<vmem>>, vector<4x1x16x128xf32>
    %31 = vector.shape_cast %30 : vector<4x1x16x128xf32> to vector<4x16x128xf32>
    %32 = vector.shape_cast %29 : vector<4x16x128xf32> to vector<4x1x16x128xf32>
    tpu.vector_store %arg4[%c0_26, %c0_27, %c0_28, %c0_29], %32 {strides = array<i32>} : memref<4x3x16x128xf32, #tpu.memory_space<vmem>>, vector<4x1x16x128xf32>,
    %33 = arith.truncf %28 : vector<64x128xf32> to vector<64x128xbf16>
    %34 = vector.shape_cast %33 : vector<64x128xbf16> to vector<4x16x128xbf16>
    %c0_30 = arith.constant 0 : index
    %c1_31 = arith.constant 1 : index
    %c0_32 = arith.constant 0 : index
    %35 = vector.load %arg5[%c0_30, %c1_31, %c0_32] : memref<4x18x128xbf16, #tpu.memory_space<vmem>>, vector<4x16x128xbf16>
    tpu.vector_store %arg5[%c0_30, %c1_31, %c0_32], %34 {strides = array<i32>} : memref<4x18x128xbf16, #tpu.memory_space<vmem>>, vector<4x16x128xbf16>,
    %c0_33 = arith.constant 0 : index
    %c0_34 = arith.constant 0 : index
    %c0_35 = arith.constant 0 : index
    %36 = vector.load %arg5[%c0_33, %c0_34, %c0_35] : memref<4x18x128xbf16, #tpu.memory_space<vmem>>, vector<4x16x128xbf16>
    %c0_36 = arith.constant 0 : index
    %c1_37 = arith.constant 1 : index
    %c0_38 = arith.constant 0 : index
    %37 = vector.load %arg5[%c0_36, %c1_37, %c0_38] : memref<4x18x128xbf16, #tpu.memory_space<vmem>>, vector<4x16x128xbf16>
    %c0_39 = arith.constant 0 : index
    %c2_40 = arith.constant 2 : index
    %c0_41 = arith.constant 0 : index
    %38 = vector.load %arg5[%c0_39, %c2_40, %c0_41] : memref<4x18x128xbf16, #tpu.memory_space<vmem>>, vector<4x16x128xbf16>
    %39 = tpu.concatenate %36, %37, %38 in 2 : vector<4x16x128xbf16>, vector<4x16x128xbf16>, vector<4x16x128xbf16> -> vector<4x16x384xbf16>
    %40 = vector.shape_cast %39 : vector<4x16x384xbf16> to vector<64x384xbf16>
    %cst_42 = arith.constant dense<0.000000e+00> : vector<64x128xf32>
    %41 = tpu.matmul %40, %5, %cst_42 {dimension_numbers = #tpu.dot_dimension_numbers<[1], [0], [0], [1], [0, 0, 1, 1], [], []>} : vector<64x384xbf16>, vector<384x128xbf16>, vector<64x128xf32> -> vector<64x128xf32>
    %42 = arith.addf %41, %8 : vector<64x128xf32>
    %cst_43 = arith.constant 5.000000e-01 : f32
    %43 = vector.broadcast %cst_43 : f32 to vector<64x128xf32>
    %44 = arith.mulf %43, %42 : vector<64x128xf32>
    %45 = arith.mulf %42, %42 : vector<64x128xf32>
    %46 = arith.mulf %45, %42 : vector<64x128xf32>
    %cst_44 = arith.constant 4.471500e-02 : f32
    %47 = vector.broadcast %cst_44 : f32 to vector<64x128xf32>
    %48 = arith.mulf %47, %46 : vector<64x128xf32>
    %49 = arith.addf %42, %48 : vector<64x128xf32>
    %cst_45 = arith.constant 0.797884583 : f32
    %50 = vector.broadcast %cst_45 : f32 to vector<64x128xf32>
    %51 = arith.mulf %50, %49 : vector<64x128xf32>
    %52 = math.tanh %51 : vector<64x128xf32>
    %cst_46 = arith.constant 1.000000e+00 : f32
    %53 = vector.broadcast %cst_46 : f32 to vector<64x128xf32>
    %54 = arith.addf %53, %52 : vector<64x128xf32>
    %55 = arith.mulf %44, %54 : vector<64x128xf32>
    %56 = vector.shape_cast %55 : vector<64x128xf32> to vector<4x16x128xf32>
    %c0_47 = arith.constant 0 : index
    %c1_48 = arith.constant 1 : index
    %c0_49 = arith.constant 0 : index
    %c0_50 = arith.constant 0 : index
    %57 = vector.load %arg4[%c0_47, %c1_48, %c0_49, %c0_50] : memref<4x3x16x128xf32, #tpu.memory_space<vmem>>, vector<4x1x16x128xf32>
    %58 = vector.shape_cast %57 : vector<4x1x16x128xf32> to vector<4x16x128xf32>
    %59 = vector.shape_cast %56 : vector<4x16x128xf32> to vector<4x1x16x128xf32>
    tpu.vector_store %arg4[%c0_47, %c1_48, %c0_49, %c0_50], %59 {strides = array<i32>} : memref<4x3x16x128xf32, #tpu.memory_space<vmem>>, vector<4x1x16x128xf32>,
    %60 = arith.truncf %55 : vector<64x128xf32> to vector<64x128xbf16>
    %61 = vector.shape_cast %60 : vector<64x128xbf16> to vector<4x16x128xbf16>
    %c0_51 = arith.constant 0 : index
    %c1_52 = arith.constant 1 : index
    %c0_53 = arith.constant 0 : index
    %62 = vector.load %arg5[%c0_51, %c1_52, %c0_53] : memref<4x18x128xbf16, #tpu.memory_space<vmem>>, vector<4x16x128xbf16>
    tpu.vector_store %arg5[%c0_51, %c1_52, %c0_53], %61 {strides = array<i32>} : memref<4x18x128xbf16, #tpu.memory_space<vmem>>, vector<4x16x128xbf16>,
    %c0_54 = arith.constant 0 : index
    %c0_55 = arith.constant 0 : index
    %c0_56 = arith.constant 0 : index
    %63 = vector.load %arg5[%c0_54, %c0_55, %c0_56] : memref<4x18x128xbf16, #tpu.memory_space<vmem>>, vector<4x16x128xbf16>
    %c0_57 = arith.constant 0 : index
    %c1_58 = arith.constant 1 : index
    %c0_59 = arith.constant 0 : index
    %64 = vector.load %arg5[%c0_57, %c1_58, %c0_59] : memref<4x18x128xbf16, #tpu.memory_space<vmem>>, vector<4x16x128xbf16>
    %c0_60 = arith.constant 0 : index
    %c2_61 = arith.constant 2 : index
    %c0_62 = arith.constant 0 : index
    %65 = vector.load %arg5[%c0_60, %c2_61, %c0_62] : memref<4x18x128xbf16, #tpu.memory_space<vmem>>, vector<4x16x128xbf16>
    %66 = tpu.concatenate %63, %64, %65 in 2 : vector<4x16x128xbf16>, vector<4x16x128xbf16>, vector<4x16x128xbf16> -> vector<4x16x384xbf16>
    %67 = vector.shape_cast %66 : vector<4x16x384xbf16> to vector<64x384xbf16>
    %cst_63 = arith.constant dense<0.000000e+00> : vector<64x128xf32>
    %68 = tpu.matmul %67, %5, %cst_63 {dimension_numbers = #tpu.dot_dimension_numbers<[1], [0], [0], [1], [0, 0, 1, 1], [], []>} : vector<64x384xbf16>, vector<384x128xbf16>, vector<64x128xf32> -> vector<64x128xf32>
    %69 = arith.addf %68, %8 : vector<64x128xf32>
    %cst_64 = arith.constant 5.000000e-01 : f32
    %70 = vector.broadcast %cst_64 : f32 to vector<64x128xf32>
    %71 = arith.mulf %70, %69 : vector<64x128xf32>
    %72 = arith.mulf %69, %69 : vector<64x128xf32>
    %73 = arith.mulf %72, %69 : vector<64x128xf32>
    %cst_65 = arith.constant 4.471500e-02 : f32
    %74 = vector.broadcast %cst_65 : f32 to vector<64x128xf32>
    %75 = arith.mulf %74, %73 : vector<64x128xf32>
    %76 = arith.addf %69, %75 : vector<64x128xf32>
    %cst_66 = arith.constant 0.797884583 : f32
    %77 = vector.broadcast %cst_66 : f32 to vector<64x128xf32>
    %78 = arith.mulf %77, %76 : vector<64x128xf32>
    %79 = math.tanh %78 : vector<64x128xf32>
    %cst_67 = arith.constant 1.000000e+00 : f32
    %80 = vector.broadcast %cst_67 : f32 to vector<64x128xf32>
    %81 = arith.addf %80, %79 : vector<64x128xf32>
    %82 = arith.mulf %71, %81 : vector<64x128xf32>
    %83 = vector.shape_cast %82 : vector<64x128xf32> to vector<4x16x128xf32>
    %c0_68 = arith.constant 0 : index
    %c2_69 = arith.constant 2 : index
    %c0_70 = arith.constant 0 : index
    %c0_71 = arith.constant 0 : index
    %84 = vector.load %arg4[%c0_68, %c2_69, %c0_70, %c0_71] : memref<4x3x16x128xf32, #tpu.memory_space<vmem>>, vector<4x1x16x128xf32>
    %85 = vector.shape_cast %84 : vector<4x1x16x128xf32> to vector<4x16x128xf32>
    %86 = vector.shape_cast %83 : vector<4x16x128xf32> to vector<4x1x16x128xf32>
    tpu.vector_store %arg4[%c0_68, %c2_69, %c0_70, %c0_71], %86 {strides = array<i32>} : memref<4x3x16x128xf32, #tpu.memory_space<vmem>>, vector<4x1x16x128xf32>,
    return
  }
  func.func @transform_0(%arg0: i32) -> (i32, i32, i32) {
    %c0_i32 = arith.constant 0 : i32
    %c0_i32_0 = arith.constant 0 : i32
    %c0_i32_1 = arith.constant 0 : i32
    return %arg0, %c0_i32, %c0_i32_0 : i32, i32, i32
  }
  func.func @transform_1(%arg0: i32) -> (i32, i32) {
    %c0_i32 = arith.constant 0 : i32
    %c0_i32_0 = arith.constant 0 : i32
    %c0_i32_1 = arith.constant 0 : i32
    return %c0_i32, %c0_i32_0 : i32, i32
  }
  func.func @transform_2(%arg0: i32) -> (i32, i32) {
    %c0_i32 = arith.constant 0 : i32
    %c0_i32_0 = arith.constant 0 : i32
    %c0_i32_1 = arith.constant 0 : i32
    return %c0_i32, %c0_i32_0 : i32, i32
  }
  func.func @transform_3(%arg0: i32) -> (i32, i32, i32, i32) {
    %c0_i32 = arith.constant 0 : i32
    %c0_i32_0 = arith.constant 0 : i32
    %c0_i32_1 = arith.constant 0 : i32
    %c0_i32_2 = arith.constant 0 : i32
    return %arg0, %c0_i32, %c0_i32_0, %c0_i32_1 : i32, i32, i32, i32
  }
}

</mosaic_0001>

<bundles_post_ra>
// kernel: tpu_custom_call.1
= control target key start
LH: loop header
LB: loop body
LE: loop exit
PB: predicated region body
PF: predicated region fallthrough
CT: control target
= control target key end

     0   :  { %8 = vsyncpa [#allocation4], 0  ;;  %s3319_s0 = inlined_call_operand.hbm [shape: bf16[8,16,128], index: 0, kind: input, shape index: {}]   ;;  %s3320_s1 = inlined_call_operand.hbm [shape: bf16[384,128], index: 1, kind: input, shape index: {}]   ;;  %s3321_s2 = inlined_call_operand.vmem [shape: f32[1,128], index: 2, kind: input, shape index: {}]   ;;  %s3322_s3 = inlined_call_operand.hbm [shape: f32[8,3,16,128], index: 3, kind: output, shape index: {}]  }
   0x1   :  { %10 = vsyncpa [#allocation4 + $0x1], 0 }
   0x2   :  { %11 = vsyncpa [#allocation7], 0 }
   0x3   :  { %12 = vsyncpa [#allocation5], 0 }
   0x4   :  { %14 = vsyncpa [#allocation5 + $0x1], 0  ;;  %s2655_s12 = smov 0   ;;  %s2657_s13 = smov 0  }
   0x5   :  { %s2659_s14 = smov 0   ;;  %s2661_s15 = smov 0  }
   0x6 LB: > { %s2676_s16 = sadd.s32 4294967295, %s2626_s15   ;;  %s1948_s17 = sadd.s32 4294967294, %s2626_s15   ;;  %s2626_s15 = sphi %s2661_s15, %s3350_s15   ;;  %s2622_s14 = sphi %s2659_s14, %s3349_s14   ;;  %s2618_s13 = sphi %s2657_s13, %s3348_s13   ;;  %s2614_s12 = sphi %s2655_s12, %s3347_s12  }
   0x7   : > { %p40_p0 = scmp.ne.s32.totalorder %s2618_s13, %s2614_s12  ;;  %p3323_p1 = scmp.eq.s32.totalorder %s2676_s16, 0 }
   0x8   : > { %p112_p3 = scmp.eq.s32.totalorder %s1948_s17, 1  ;;  %p1949_p5 = scmp.ge.s32.totalorder %s2626_s15, 1 }
   0x9   : > { %p2685_p4 = por %p3323_p1, %p40_p0  ;;  %p119_p7 = scmp.lt.s32.totalorder %s2626_s15, 3 }
   0xa   : > { %p2690_p6 = por %p112_p3, %p40_p0  ;;  %s2628_s21 = smov [#allocation6]  }
   0xb   : > { %s3326_s18 = scalar_select %p2685_p4, 1, 0 }
   0xc   : > { %s3327_s19 = scalar_select %p2690_p6, 1, 0 }
   0xd   : > { %p2695_p8 = pnand %p1949_p5, %p119_p7  ;;  %s131_s22 = sshll.u32 %s2628_s21, 4  ;;  %s2699_s22 = int_to_ptr.vmem [resolvable:$true] %s131_s22 }
   0xe   : > { %s2711_s24 = sadd.s32 1, %s2626_s15   ;;  %s27_s25 = sadd.s32 1, %s2622_s14 }
   0xf   : > { %s3328_s20 = scalar_select %p2695_p8, 1, 0 }
  0x10   : > { %p2313_p9 = pneg %p2695_p8  ;;  %s24_s26 = ssub.s32 %s2626_s15, %s2711_s24 }
  0x11   : > { %s2498_s29 = scalar_lea.hbm %s3320_s1, 3072 }
  0x12   : > { %p2706_p11 = pnand %p2313_p9, %p3323_p1  ;;  %p2499_p12 = scmp.ne.s32.totalorder %s3320_s1, %s2498_s29 }
  0x13   : > { %p2505_p5 = scmp.lt.u32.totalorder %s2498_s29, %s3320_s1 }
  0x14   : > { %p2500_p13 = pneg %p2706_p11 }
  0x16   : > { %p2501_p0 = pnand %p2500_p13, %p2499_p12 }
  0x18   : > { %p2502_p3 = pneg %p2501_p0 }
  0x1a   : > { %p2507_p7 = pnand %p2505_p5, %p2502_p3 }
  0x1c   : > { %2510 = shalt.err (!%p2507_p7)
}
  0x1d   : > { %s2511_s7 = scalar_lea.vmem %s2699_s22, 3072  ;;  %p2519_p2 = scmp.lt.s32.totalorder %s2699_s22, %s2699_s22 }
  0x1e   : > { %p2512_p9 = scmp.ne.s32.totalorder %s2699_s22, %s2511_s7  ;;  %p2520_p6 = scmp.lt.s32.totalorder %s2511_s7, %s2511_s7 }
  0x20   : > { %p2514_p10 = pnand %p2512_p9, %p2500_p13  ;;  %p2521_p4 = por %p2520_p6, %p2519_p2 }
  0x22   : > { %p2515_p1 = pneg %p2514_p10 }
  0x24   : > { %p2522_p8 = pnand %p2521_p4, %p2515_p1 }
  0x26   : > { %2525 = shalt.err (!%p2522_p8)
}
  0x27   : > { %s2629_s8 = smov 64   ;;  %s2630_s9 = smov 4  }
  0x28   : > { %2316 = dma.hbm_to_vmem [thread:$0]  (!%p2706_p11), %s3320_s1, 3072, %s2699_s22, [#allocation7], %s2629_s8, %s2629_s8, %s2630_s9  }
  0x29   : > { %p25_p1 = scmp.eq.s32.totalorder %s24_s26, 0  ;;  %p34_p2 = scmp.ne.s32.totalorder %s2622_s14, %s2618_s13 }
  0x2a   : > { %p35_p4 = scmp.eq.s32.totalorder %s2626_s15, 0  ;;  %p2326_p6 = scmp.lt.s32.totalorder %s2626_s15, 2 }
  0x2b   : > { %s2745_s17 = scalar_select %p25_p1, %s2622_s14, %s27_s25  }
  0x2c   : > { %p36_p8 = por %p35_p4, %p34_p2  ;;  %p3330_p10 = scmp.eq.s32.totalorder %s2676_s16, 1 }
  0x2d   : > { %s148_s23 = sand.u32 1, %s2622_s14   ;;  %s2058_s27 = sshll.u32 %s2626_s15, 9 }
  0x2e   : > { %p2749_p12 = por %p3330_p10, %p34_p2  ;;  %s1952_s28 = sshll.u32 %s148_s23, 5 }
  0x2f   : > { %s2758_s4 = scalar_lea.hbm %s3319_s0, %s2058_s27  ;;  %s152_s22 = scalar_lea.vmem [#allocation3], %s1952_s28 }
  0x30   : > { %s160_s25 = sshll.u32 %s152_s22, 4  ;;  %p2760_p11 = pnand %p2326_p6, %p36_p8  ;;  %s2764_s25 = int_to_ptr.vmem [resolvable:$true] %s160_s25 }
  0x31   : > { %s2766_s5 = scalar_lea.sflag [#allocation4], %s148_s23  ;;  %s2526_s6 = scalar_lea.hbm %s2758_s4, 512 }
  0x32   : > { %p2527_p13 = scmp.ne.s32.totalorder %s2758_s4, %s2526_s6  ;;  %p2528_p0 = pneg %p2760_p11 }
  0x33   : > { %s2531_s11 = scalar_lea.hbm %s3319_s0, 1024  ;;  %p2532_p7 = scmp.lt.u32.totalorder %s2758_s4, %s3319_s0 }
  0x34   : > { %p2529_p3 = pnand %p2528_p0, %p2527_p13  ;;  %p2533_p9 = scmp.lt.u32.totalorder %s2531_s11, %s2526_s6 }
  0x35   : > { %p2535_p2 = scmp.lt.u32.totalorder %s2526_s6, %s2758_s4 }
  0x36   : > { %p2530_p5 = pneg %p2529_p3  ;;  %p2534_p1 = por %p2533_p9, %p2532_p7 }
  0x38   : > { %p2536_p4 = por %p2535_p2, %p2534_p1 }
  0x3a   : > { %p2537_p6 = pnand %p2536_p4, %p2530_p5 }
  0x3c   : > { %2540 = shalt.err (!%p2537_p6)
}
  0x3d   : > { %s2541_s23 = scalar_lea.vmem %s2764_s25, 512  ;;  %s2631_s29 = smov [#allocation3]  }
  0x3e   : > { %p2542_p8 = scmp.ne.s32.totalorder %s2764_s25, %s2541_s23  ;;  %s2546_s30 = sshll.u32 %s2631_s29, 4  ;;  %s2547_s30 = int_to_ptr.vmem [resolvable:$false] %s2546_s30 }
  0x3f   : > { %s2548_s22 = scalar_lea.vmem %s2547_s30, 1024  ;;  %p2549_p3 = scmp.lt.s32.totalorder %s2764_s25, %s2547_s30 }
  0x40   : > { %p2544_p10 = pnand %p2542_p8, %p2528_p0  ;;  %p2550_p7 = scmp.lt.s32.totalorder %s2548_s22, %s2541_s23 }
  0x42   : > { %p2545_p13 = pneg %p2544_p10  ;;  %p2551_p9 = por %p2550_p7, %p2549_p3 }
  0x44   : > { %p2552_p1 = pnand %p2551_p9, %p2545_p13 }
  0x46   : > { %2555 = shalt.err (!%p2552_p1)
}
  0x47   : > { %2320 = dma.hbm_to_vmem [thread:$0]  (!%p2760_p11), %s2758_s4, 512, %s2764_s25, %s2766_s5, %s2629_s8, %s2629_s8, %s2630_s9  }
  0x48   : > { %p3333_p0 = scmp.ne.s32.totalorder %s3328_s20, 0 }
  0x49   : > { %s2800_s6 = sand.u32 (!%p3333_p0), 1, %s2618_s13   ;;  %p3334_p5 = scmp.ne.s32.totalorder (!%p3333_p0), %s3326_s18, 0 }
  0x4a   : > { %172 = sbr.rel (%p3333_p0) target bundleno = 960 (0x3c0), region = 32  ;;  %s1957_s7 = sshll.u32 (!%p3333_p0), %s2800_s6, 5 }
  0x4b   : > { %s175_s10 = scalar_lea.sflag (!%p3333_p0), [#allocation4], %s2800_s6  ;;  %s2804_s11 = scalar_lea.vmem (!%p3333_p0), [#allocation3], %s1957_s7 }
  0x51   : > { %2601 = dma.done.wait (%p3334_p5), %s175_s10, 512  }
  0x52   : > { %2603 = vsyncadd (%p3334_p5), %s175_s10, 4294966784  ;;  %p3335_p11 = scmp.eq.s32.totalorder %s2676_s16, 0 }
  0x54   : > { %2605 = dma.done.wait (%p3335_p11), [#allocation7], 3072   ;;  %p3336_p2 = pmov %p3335_p11 }
  0x55   : > { %v2814_v0 = vld [vmem:[#allocation6 + $0x40] sm:$0xff]   ;;  %v2822_v3 = vld [vmem:[#allocation6 + $0x48] sm:$0xff]   ;;  %vm209_vm0 = vsmask.f32 256  ;;  %v2831_v6 = vld [vmem:[#allocation6 + $0x50] sm:$0xff]   ;;  %vm208_vm1 = vcmask 1040384  }
  0x56   : > { %2607 = vsyncadd (%p3336_p2), [#allocation7], 4294964224  ;;  %v2816_v1 = vld [vmem:[#allocation6] sm:$0xff]   ;;  %2075 = vmatprep.subr.bf16.mxu0 %v2814_v0  ;;  %v2825_v4 = vld [vmem:[#allocation6 + $0x8] sm:$0xff]   ;;  %vm223_vm2 = vsmask.f32 7938 }
  0x57   : > { %v2819_v2 = vld [vmem:[#allocation6 + $0x80] sm:$0xff]   ;;  %2076 = vmatpush3.bf16.msra.mxu0 %v2816_v1  ;;  %v2829_v5 = vld [vmem:[#allocation6 + $0x88] sm:$0xff]   ;;  %v2835_v7 = vld [vmem:[#allocation6 + $0x10] sm:$0xff]   ;;  %vm245_vm5 = vsmask.f32 4368  ;;  %vm327_vm6 = vcmask 1043456  }
  0x58   : > { %2231 = vmatprep.subr.bf16.mxu1 %v2819_v2  ;;  %2077 = vmatprep.subr.bf16.mxu0 %v2822_v3  ;;  %v2838_v8 = vld [vmem:[#allocation6 + $0x90] sm:$0xff]   ;;  %v2841_v9 = vld [vmem:[#allocation6 + $0x58] sm:$0xff]   ;;  %v2850_v12 = vld [vmem:[#allocation6 + $0x60] sm:$0xff]   ;;  %vm464_vm9 = vsmask.f32 7424  ;;  %vm529_vm10 = vcmask 1046528  }
  0x59   : > { %2232 = vmatpush3.bf16.msra.mxu1 %v2819_v2  ;;  %v2844_v10 = vld [vmem:[#allocation6 + $0x18] sm:$0xff]   ;;  %v2854_v13 = vld [vmem:[#allocation6 + $0xa0] sm:$0xff]   ;;  %vm2857_vm3 = vmand %vm208_vm1, %vm209_vm0  ;;  %s2303_s8 = smul.u32 192, %s2800_s6  ;;  %s1851_s29 = scalar_lea.sflag [#allocation5], %s2800_s6 }
  0x5a   : > { %2233 = vmatprep.subr.bf16.mxu1 %v2829_v5  ;;  %v2847_v11 = vld [vmem:[#allocation6 + $0x98] sm:$0xff]   ;;  %v2862_v15 = vld [vmem:[#allocation6 + $0x20] sm:$0xff]   ;;  %v2865_v16 = vld [vmem:[#allocation6 + $0x68] sm:$0xff]   ;;  %s2304_s26 = smul.u32 3072, %s2676_s16  ;;  %s2632_s30 = smov [#allocation8]  }
  0x5b   : > { %2078 = vmatpush3.bf16.msra.mxu0 %v2825_v4  ;;  %vm2869_vm4 = vmand %vm208_vm1, %vm223_vm2  ;;  %v2874_v18 = vld [vmem:[#allocation6 + $0xa8] sm:$0xff]   ;;  %v2880_v20 = vld [vmem:[#allocation6 + $0x70] sm:$0xff]   ;;  %s3073_s9 = scalar_lea.vmem [#allocation8], %s2303_s8  ;;  %s2560_s22 = sshll.u32 %s2632_s30, 4  ;;  %s2561_s22 = int_to_ptr.vmem [resolvable:$false] %s2560_s22 }
  0x5c   : > { %2079 = vmatprep.subr.bf16.mxu0 %v2831_v6  ;;  %v2877_v19 = vld [vmem:[#allocation6 + $0x28] sm:$0xff]   ;;  %v2883_v21 = vld [vmem:[#allocation6 + $0x30] sm:$0xff]   ;;  %v2889_v23 = vld [vmem:[#allocation6 + $0x78] sm:$0xff]   ;;  %s1865_s5 = sshll.u32 %s3073_s9, 4  ;;  %s3272_s23 = scalar_lea.hbm %s3322_s3, %s2304_s26  ;;  %s3274_s5 = int_to_ptr.vmem [resolvable:$true] %s1865_s5 }
  0x5d   : > { %2234 = vmatpush3.bf16.msra.mxu1 %v2829_v5  ;;  %v2886_v22 = vld [vmem:[#allocation6 + $0xb0] sm:$0xff]   ;;  %v2892_v24 = vld [vmem:[#allocation6 + $0xb8] sm:$0xff]   ;;  %v237_v27 = vld [vmem:[%s2804_s11] sm:$0xf]  ;;  %s2556_s16 = scalar_lea.vmem %s3274_s5, 3072  ;;  %s2562_s7 = scalar_lea.vmem %s2561_s22, 6144 }
  0x5e   : > { %2235 = vmatprep.subr.bf16.mxu1 %v2838_v8  ;;  %v211_v25 = vld [vmem:[#allocation2] sm:$0x1]  ;;  %v225_v26 = vld [vmem:[#allocation2 + $0x8] sm:$0x1]  ;;  %v238_v30 = vld [vmem:[%s2804_s11 + $0x4] sm:$0xf]  ;;  %p2557_p4 = scmp.ne.s32.totalorder %s3274_s5, %s2556_s16  ;;  %p2563_p10 = scmp.lt.s32.totalorder %s3274_s5, %s2561_s22 }
  0x5f   : > { %2080 = vmatpush3.bf16.msra.mxu0 %v2835_v7  ;;  %v212_v28 = vsel %vm2857_vm3, 0, %v211_v25  ;;  %v226_v29 = vsel %vm2869_vm4, 0, %v225_v26  ;;  %v248_v31 = vshrl.u32 %v237_v27, 16  ;;  %v251_v32 = vshll.u32 %v237_v27, 16  ;;  %v214_v35 = vld [vmem:[#allocation2 + $0xc] sm:$0x1]  ;;  %vm2915_vm7 = vmor %vm209_vm0, %vm245_vm5  ;;  %p2564_p13 = scmp.lt.s32.totalorder %s2562_s7, %s2556_s16 }
  0x60   : > { %2081 = vmatprep.subr.bf16.mxu0 %v2841_v9  ;;  %213 = vst [vmem:[#allocation2] sm:$0x1] %v212_v28  ;;  %227 = vst [vmem:[#allocation2 + $0x8] sm:$0x1] %v226_v29  ;;  %v256_v33 = vshrl.u32 %v238_v30, 16  ;;  %v259_v34 = vshll.u32 %v238_v30, 16  ;;  %p2558_p6 = pnand %p2557_p4, %p2749_p12 }
  0x61   : > { %2236 = vmatpush3.bf16.msra.mxu1 %v2838_v8  ;;  %v228_v36 = vld [vmem:[#allocation2 + $0x14] sm:$0x1]  ;;  %v2903_v37 = vld [vmem:[#allocation6 + $0x38] sm:$0xff]   ;;  %v250_v38 = vrot.slane %v248_v31, 7  ;;  %v215_v39 = vsel %vm2857_vm3, 0, %v214_v35  ;;  %vm2925_vm8 = vmand %vm327_vm6, %vm223_vm2  ;;  %p2565_p3 = por %p2564_p13, %p2563_p10 }
  0x62   : > { %2237 = vmatprep.subr.bf16.mxu1 %v2847_v11  ;;  %v229_v40 = vsel %vm2869_vm4, 0, %v228_v36  ;;  %v239_v41 = vld [vmem:[%s2804_s11 + $0x8] sm:$0xf]  ;;  %v258_v42 = vrot.slane %v256_v33, 7  ;;  %216 = vst [vmem:[#allocation2 + $0xc] sm:$0x1] %v215_v39  ;;  %p2559_p8 = pneg %p2558_p6 }
  0x63   : > { %2082 = vmatpush3.bf16.msra.mxu0 %v2844_v10  ;;  %230 = vst [vmem:[#allocation2 + $0x14] sm:$0x1] %v229_v40  ;;  %v240_v43 = vld [vmem:[%s2804_s11 + $0xc] sm:$0xf]  ;;  %v265_v44 = vshrl.u32 %v239_v41, 16  ;;  %v268_v45 = vshll.u32 %v239_v41, 16  ;;  %v253_v47 = vor.u32 %v251_v32, %v250_v38 }
  0x64   : > { %2083 = vmatprep.subr.bf16.mxu0 %v2850_v12  ;;  %v254_v48 = vrot.slane %v250_v38, 4  ;;  %v273_v49 = vshrl.u32 %v240_v43, 16  ;;  %v276_v50 = vshll.u32 %v240_v43, 16  ;;  %v217_v51 = vld [vmem:[#allocation2 + $0x18] sm:$0x1]  ;;  %v261_v52 = vor.u32 %v259_v34, %v258_v42  ;;  %p2566_p7 = pnand %p2565_p3, %p2559_p8 }
  0x65   : > { %2238 = vmatpush3.bf16.msra.mxu1 %v2847_v11  ;;  %v263_v53 = vrot.slane %v258_v42, 4  ;;  %v267_v54 = vrot.slane %v265_v44, 7  ;;  %v218_v55 = vsel %vm2857_vm3, 0, %v217_v51  ;;  %v231_v56 = vld [vmem:[#allocation2 + $0x20] sm:$0x1] }
  0x66   : > { %2239 = vmatprep.subr.bf16.mxu1 %v2854_v13  ;;  %v275_v58 = vrot.slane %v273_v49, 7  ;;  %219 = vst [vmem:[#allocation2 + $0x18] sm:$0x1] %v218_v55  ;;  %v232_v59 = vsel %vm2869_vm4, 0, %v231_v56  ;;  %v241_v60 = vld [vmem:[%s2804_s11 + $0x10] sm:$0xf]  ;;  %v262_v62 = vsel %vm2915_vm7, %v254_v48, %v261_v52 }
  0x67   : > { %2084 = vmatpush3.bf16.msra.mxu0 %v2862_v15  ;;  %v242_v61 = vld [vmem:[%s2804_s11 + $0x14] sm:$0xf]  ;;  %v270_v63 = vor.u32 %v268_v45, %v267_v54  ;;  %v271_v25 = vrot.slane %v267_v54, 4  ;;  %233 = vst [vmem:[#allocation2 + $0x20] sm:$0x1] %v232_v59  ;;  %v282_v26 = vshrl.u32 %v241_v60, 16 }
  0x68   : > { %2085 = vmatprep.subr.bf16.mxu0 %v2865_v16  ;;  %v220_v27 = vld [vmem:[#allocation2 + $0x24] sm:$0x1]  ;;  %v234_v28 = vld [vmem:[#allocation2 + $0x2c] sm:$0x1]  ;;  %v329_v29 = vld [vmem:[#allocation2] sm:$0xf]  ;;  %v278_v31 = vor.u32 %v276_v50, %v275_v58 }
  0x69   : > { %2240 = vmatpush3.bf16.msra.mxu1 %v2854_v13  ;;  %332 = vst [vmem:[#allocation2 + $0x4] sm:$0xf] %v262_v62  ;;  %v333_v30 = vld [vmem:[#allocation2 + $0x8] sm:$0x1]  ;;  %v280_v32 = vrot.slane %v275_v58, 4  ;;  %v285_v33 = vshll.u32 %v241_v60, 16  ;;  %v330_v34 = vsel %vm2925_vm8, %v253_v47, %v329_v29 }
  0x6a   : > { %2241 = vmatprep.subr.bf16.mxu1 %v2874_v18  ;;  %v334_v35 = vsel %vm2857_vm3, %v263_v53, %v333_v30  ;;  %v284_v36 = vrot.slane %v282_v26, 7  ;;  %v290_v38 = vshrl.u32 %v242_v61, 16  ;;  %v243_v39 = vld [vmem:[%s2804_s11 + $0x18] sm:$0xf]  ;;  %v244_v40 = vld [vmem:[%s2804_s11 + $0x1c] sm:$0xf]  ;;  %v279_v41 = vsel %vm2915_vm7, %v271_v25, %v278_v31 }
  0x6b   : > { %2086 = vmatpush3.bf16.msra.mxu0 %v2877_v19  ;;  %331 = vst [vmem:[#allocation2] sm:$0xf] %v330_v34  ;;  %335 = vst [vmem:[#allocation2 + $0x8] sm:$0x1] %v334_v35  ;;  %v336_v42 = vld [vmem:[#allocation2 + $0xc] sm:$0xf] }
  0x6c   : > { %2087 = vmatprep.subr.bf16.mxu0 %v2880_v20  ;;  %v340_v43 = vld [vmem:[#allocation2 + $0x14] sm:$0x1]  ;;  %v293_v44 = vshll.u32 %v242_v61, 16  ;;  %v221_v45 = vsel %vm2857_vm3, 0, %v220_v27  ;;  %v337_v47 = vsel %vm2925_vm8, %v270_v63, %v336_v42  ;;  %339 = vst [vmem:[#allocation2 + $0x10] sm:$0xf] %v279_v41  ;;  %v287_v49 = vor.u32 %v285_v33, %v284_v36 }
  0x6d   : > { %2242 = vmatpush3.bf16.msra.mxu1 %v2874_v18  ;;  %v341_v48 = vsel %vm2857_vm3, %v280_v32, %v340_v43  ;;  %222 = vst [vmem:[#allocation2 + $0x24] sm:$0x1] %v221_v45  ;;  %338 = vst [vmem:[#allocation2 + $0xc] sm:$0xf] %v337_v47  ;;  %v288_v50 = vrot.slane %v284_v36, 4  ;;  %v292_v51 = vrot.slane %v290_v38, 7 }
  0x6e   : > { %2243 = vmatprep.subr.bf16.mxu1 %v2886_v22  ;;  %342 = vst [vmem:[#allocation2 + $0x14] sm:$0x1] %v341_v48  ;;  %v235_v52 = vsel %vm2869_vm4, 0, %v234_v28  ;;  %v299_v53 = vshrl.u32 %v243_v39, 16  ;;  %v343_v54 = vld [vmem:[#allocation2 + $0x18] sm:$0xf] }
  0x6f   : > { %2088 = vmatpush3.bf16.msra.mxu0 %v2883_v21  ;;  %236 = vst [vmem:[#allocation2 + $0x2c] sm:$0x1] %v235_v52  ;;  %v302_v55 = vshll.u32 %v243_v39, 16  ;;  %v307_v56 = vshrl.u32 %v244_v40, 16  ;;  %v310_v58 = vshll.u32 %v244_v40, 16  ;;  %v295_v59 = vor.u32 %v293_v44, %v292_v51 }
  0x70   : > { %2089 = vmatprep.subr.bf16.mxu0 %v2889_v23  ;;  %v297_v60 = vrot.slane %v292_v51, 4  ;;  %v344_v61 = vsel %vm2925_vm8, %v287_v49, %v343_v54  ;;  %v347_v62 = vld [vmem:[#allocation2 + $0x20] sm:$0x1]  ;;  %v301_v63 = vrot.slane %v299_v53, 7  ;;  %v413_v25 = vld [vmem:[#allocation2 + $0x4] sm:$0xf] }
  0x71   : > { %2244 = vmatpush3.bf16.msra.mxu1 %v2886_v22  ;;  %345 = vst [vmem:[#allocation2 + $0x18] sm:$0xf] %v344_v61  ;;  %v309_v26 = vrot.slane %v307_v56, 7  ;;  %v296_v17 = vsel %vm2915_vm7, %v288_v50, %v295_v59 }
  0x72   : > { %2245 = vmatprep.subr.bf16.mxu1 %v2892_v24  ;;  %v348_v27 = vsel %vm2857_vm3, %v297_v60, %v347_v62  ;;  %v305_v28 = vrot.slane %v301_v63, 4  ;;  %v412_v29 = vld [vmem:[#allocation2] sm:$0xf]  ;;  %346 = vst [vmem:[#allocation2 + $0x1c] sm:$0xf] %v296_v17  ;;  %v304_v31 = vor.u32 %v302_v55, %v301_v63 }
  0x73   : > { %2090 = vmatpush3.bf16.msra.mxu0 %v2903_v37  ;;  %v424_v30 = vld [vmem:[#allocation2] sm:$0xe]  ;;  %349 = vst [vmem:[#allocation2 + $0x20] sm:$0x1] %v348_v27  ;;  %v312_v32 = vor.u32 %v310_v58, %v309_v26  ;;  %v1960_v33 = vcombine.low %v412_v29, %v413_v25  ;;  %v415_v36 = vld [vmem:[#allocation2 + $0x10] sm:$0xf] }
  0x74   : > { %2127 = vmatprep.subr.bf16.mxu0 %v2814_v0  ;;  %v2391_v34 = vld [vmem:[#allocation2 + $0x8] ss:$0 sps:$4 sm:$0x11]   ;;  %v1968_v35 = vcombine.low %v424_v30, %v413_v25  ;;  %v314_v38 = vrot.slane %v309_v26, 4  ;;  %v425_v39 = vld [vmem:[#allocation2 + $0xc] sm:$0xe] }
  0x75   : > { %2246 = vmatpush3.bf16.msra.mxu1 %v2892_v24  ;;  %v414_v40 = vld [vmem:[#allocation2 + $0xc] sm:$0xf]  ;;  %v313_v41 = vsel %vm2915_vm7, %v305_v28, %v312_v32  ;;  %v466_v42 = vshrl.u32 %v1960_v33, 16  ;;  %v468_v43 = vshll.u32 %v1960_v33, 16  ;;  %v473_v44 = vshll.u32 %v2391_v34, 16 }
  0x76   : > { %2255 = vmatprep.subr.bf16.mxu1 %v2819_v2  ;;  %v530_v45 = vrot.slane %v1968_v35, 1  ;;  %v350_v47 = vld [vmem:[#allocation2 + $0x24] sm:$0xf]  ;;  %353 = vst [vmem:[#allocation2 + $0x28] sm:$0xf] %v313_v41  ;;  %v531_v48 = vrot.slane %v2391_v34, 1  ;;  %v1969_v50 = vcombine.low %v425_v39, %v415_v36  ;;  %v2962_v51 = vcombine.low %v414_v40, %v415_v36 }
  0x77   : > { %v2393_v49 = vld [vmem:[#allocation2 + $0x14] ss:$0 sps:$4 sm:$0x11]   ;;  %v351_v52 = vsel %vm2925_vm8, %v304_v31, %v350_v47  ;;  %v354_v53 = vld [vmem:[#allocation2 + $0x2c] sm:$0x1]  ;;  %v470_v54 = vrot.slane %v468_v43, 1 }
  0x78   : > { %v475_v55 = vrot.slane %v473_v44, 1  ;;  %v416_v56 = vld [vmem:[#allocation2 + $0x18] sm:$0xf]  ;;  %352 = vst [vmem:[#allocation2 + $0x24] sm:$0xf] %v351_v52  ;;  %v355_v59 = vsel %vm2857_vm3, %v314_v38, %v354_v53  ;;  %v532_v60 = vsel %vm529_vm10, %v530_v45, %v531_v48  ;;  %v533_v61 = vrot.slane %v1969_v50, 1 }
  0x79   : > { %v426_v58 = vld [vmem:[#allocation2 + $0x18] sm:$0xe]  ;;  %v534_v62 = vrot.slane %v2393_v49, 1  ;;  %v478_v63 = vshrl.u32 %v2962_v51, 16  ;;  %356 = vst [vmem:[#allocation2 + $0x2c] sm:$0x1] %v355_v59  ;;  %v471_v25 = vor.u32 %v470_v54, %v466_v42  ;;  %2247 = vmatprep.mubr.bf16.mxu1 %v532_v60 }
  0x7a   : > { %v480_v26 = vshll.u32 %v2962_v51, 16  ;;  %v485_v17 = vshll.u32 %v2393_v49, 16  ;;  %v417_v27 = vld [vmem:[#allocation2 + $0x1c] sm:$0xf] }
  0x7b   : > { %v535_v28 = vsel %vm529_vm10, %v533_v61, %v534_v62  ;;  %v1962_v29 = vcombine.low %v416_v56, %v417_v27  ;;  %v2397_v30 = vld [vmem:[#allocation2 + $0x20] ss:$0 sps:$4 sm:$0x11]   ;;  %v1970_v31 = vcombine.low %v426_v58, %v417_v27  ;;  %v476_v32 = vsel %vm464_vm9, %v471_v25, %v475_v55 }
  0x7c   : > { %2248 = vmatmul.mubr.bf16.vlgmr.msra.gmra.mrb[0].mxu1 %v535_v28  ;;  %v482_v34 = vrot.slane %v480_v26, 1  ;;  %v487_v35 = vrot.slane %v485_v17, 1  ;;  %722 = vmatprep.mubr.bf16.mxu0 %v476_v32  ;;  %v497_v39 = vshll.u32 %v2397_v30, 16  ;;  %v537_v43 = vrot.slane %v2397_v30, 1 }
  0x7d   : > { %v490_v36 = vshrl.u32 %v1962_v29, 16  ;;  %v492_v38 = vshll.u32 %v1962_v29, 16  ;;  %v536_v40 = vrot.slane %v1970_v31, 1  ;;  %v419_v41 = vld [vmem:[#allocation2 + $0x28] sm:$0xf]  ;;  %2256 = vmatpush3.bf16.msra.mxu1 %v2819_v2  ;;  %723 = vmatmul.mubr.bf16.vlgmr.msra.gmra.mrb[0].mxu0 %v1960_v33 }
  0x7e   : > { %v483_v42 = vor.u32 %v482_v34, %v478_v63  ;;  %2257 = vmatprep.subr.bf16.mxu1 %v2829_v5  ;;  %v499_v45 = vrot.slane %v497_v39, 1  ;;  %2128 = vmatpush3.bf16.msra.mxu0 %v2816_v1 }
  0x7f   : > { %v494_v44 = vrot.slane %v492_v38, 1  ;;  %v427_v47 = vld [vmem:[#allocation2 + $0x24] sm:$0xe]  ;;  %v538_v50 = vsel %vm529_vm10, %v536_v40, %v537_v43  ;;  %2129 = vmatprep.subr.bf16.mxu0 %v2822_v3 }
  0x80   : > { %v418_v48 = vld [vmem:[#allocation2 + $0x24] sm:$0xf]  ;;  %v488_v49 = vsel %vm464_vm9, %v483_v42, %v487_v35  ;;  %v2399_v52 = vld [vmem:[#allocation2 + $0x2c] ss:$0 sps:$4 sm:$0x11]   ;;  %v1971_v53 = vcombine.low %v427_v47, %v419_v41  ;;  %2251 = vmatprep.mubr.bf16.mxu1 %v538_v50 }
  0x81   : > { %v1963_v54 = vcombine.low %v418_v48, %v419_v41  ;;  %730 = vmatprep.mubr.bf16.mxu0 %v488_v49  ;;  %v495_v33 = vor.u32 %v494_v44, %v490_v36  ;;  %v540_v56 = vrot.slane %v2399_v52, 1  ;;  %2258 = vmatpush3.bf16.msra.mxu1 %v2829_v5  ;;  %v509_v62 = vshll.u32 %v2399_v52, 16 }
  0x82   : > { %v539_v55 = vrot.slane %v1971_v53, 1  ;;  %2130 = vmatpush3.bf16.msra.mxu0 %v2825_v4  ;;  %2259 = vmatprep.subr.bf16.mxu1 %v2838_v8 }
  0x83   : > { %v504_v58 = vshll.u32 %v1963_v54, 16  ;;  %v502_v59 = vshrl.u32 %v1963_v54, 16  ;;  %v500_v1 = vsel %vm464_vm9, %v495_v33, %v499_v45  ;;  %2131 = vmatprep.subr.bf16.mxu0 %v2831_v6  ;;  %v511_v4 = vrot.slane %v509_v62, 1 }
  0x84   : > { %v541_v60 = vsel %vm529_vm10, %v539_v55, %v540_v56 }
  0x85   : > { %v506_v61 = vrot.slane %v504_v58, 1  ;;  %2252 = vmatmul.mubr.bf16.gmra.mrb[4].mxu1 %v541_v60  ;;  %731 = vmatmul.mubr.bf16.gmra.mrb[4].mxu0 %v2962_v51 }
  0x86   : > { %2260 = vmatpush3.bf16.msra.mxu1 %v2838_v8  ;;  %738 = vmatprep.mubr.bf16.mxu0 %v500_v1 }
  0x87   : > { %2132 = vmatpush3.bf16.msra.mxu0 %v2835_v7  ;;  %v507_v3 = vor.u32 %v506_v61, %v502_v59  ;;  %2261 = vmatprep.subr.bf16.mxu1 %v2847_v11 }
  0x88   : > { %2133 = vmatprep.subr.bf16.mxu0 %v2841_v9 }
  0x89   : > { %v512_v5 = vsel %vm464_vm9, %v507_v3, %v511_v4 }
  0x8a   : > { %2262 = vmatpush3.bf16.msra.mxu1 %v2847_v11  ;;  %v3014_v11 = vld [vmem:[%s3321_s2] ss:$0 sm:$0xff] }
  0x8b   : > { %2134 = vmatpush3.bf16.msra.mxu0 %v2844_v10  ;;  %2263 = vmatprep.subr.bf16.mxu1 %v2854_v13 }
  0x8c   : > { %2135 = vmatprep.subr.bf16.mxu0 %v2850_v12 }
  0x8d   : > { %739 = vmatmul.mubr.bf16.gmra.mrb[8].mxu0 %v1962_v29 }
  0x8e   : > { %2264 = vmatpush3.bf16.msra.mxu1 %v2854_v13  ;;  %746 = vmatprep.mubr.bf16.mxu0 %v512_v5 }
  0x8f   : > { %2136 = vmatpush3.bf16.msra.mxu0 %v2862_v15  ;;  %2265 = vmatprep.subr.bf16.mxu1 %v2874_v18 }
  0x90   : > { %2137 = vmatprep.subr.bf16.mxu0 %v2865_v16 }
  0x92   : > { %2266 = vmatpush3.bf16.msra.mxu1 %v2874_v18 }
  0x93   : > { %2138 = vmatpush3.bf16.msra.mxu0 %v2877_v19  ;;  %2267 = vmatprep.subr.bf16.mxu1 %v2886_v22 }
  0x94   : > { %2139 = vmatprep.subr.bf16.mxu0 %v2880_v20 }
  0x95   : > { %747 = vmatmul.mubr.bf16.gmra.mrb[12].mxu0 %v1963_v54 }
  0x96   : > { %2268 = vmatpush3.bf16.msra.mxu1 %v2886_v22 }
  0x97   : > { %2140 = vmatpush3.bf16.msra.mxu0 %v2883_v21  ;;  %2269 = vmatprep.subr.bf16.mxu1 %v2892_v24 }
  0x98   : > { %2141 = vmatprep.subr.bf16.mxu0 %v2889_v23 }
  0x9a   : > { %2270 = vmatpush3.bf16.msra.mxu1 %v2892_v24 }
  0x9b   : > { %2142 = vmatpush3.bf16.msra.mxu0 %v2903_v37  ;;  %2279 = vmatprep.subr.bf16.mxu1 %v2819_v2 }
  0x9c   : > { %2179 = vmatprep.subr.bf16.mxu0 %v2814_v0 }
 0x14f   : > { %v2249_v6 = vpop.f32.mrb[0].mxu1 }
 0x150   : > { %v789_v7 = vpop.f32.mrb[1].mxu1  ;;  %v2091_v8 = vpop.f32.mrb[0].mxu0 }
 0x151   : > { %v2250_v9 = vpop.f32.mrb[2].mxu1  ;;  %v2092_v10 = vpop.f32.mrb[1].mxu0 }
 0x152   : > { %v792_v12 = vpop.f32.mrb[3].mxu1  ;;  %v2093_v13 = vadd.f32 %v2092_v10, %v2091_v8  ;;  %v2094_v15 = vpop.f32.mrb[2].mxu0 }
 0x153   : > { %v2095_v16 = vpop.f32.mrb[3].mxu0 }
 0x154   : > { %v725_v18 = vadd.f32 %v2093_v13, %v3014_v11  ;;  %v2096_v19 = vadd.f32 %v2095_v16, %v2094_v15 }
 0x156   : > { %v3017_v2 = vadd.f32 %v789_v7, %v725_v18  ;;  %v728_v0 = vadd.f32 %v2096_v19, %v3014_v11 }
 0x158   : > { %v3020_v20 = vpop.f32.mrb[4].mxu1  ;;  %v828_v21 = vmul.f32 %v3017_v2, %v3017_v2  ;;  %v3024_v22 = vadd.f32 %v792_v12, %v728_v0  ;;  %v2097_v23 = vpop.f32.mrb[4].mxu0  ;;  %v820_v19 = vmul.f32 0.5, %v3017_v2 }
 0x159   : > { %v805_v24 = vpop.f32.mrb[5].mxu1  ;;  %v2098_v37 = vpop.f32.mrb[5].mxu0 }
 0x15a   : > { %v3026_v51 = vpop.f32.mrb[6].mxu1  ;;  %v836_v63 = vmul.f32 %v828_v21, %v3017_v2  ;;  %v829_v25 = vmul.f32 %v3024_v22, %v3024_v22  ;;  %v2099_v26 = vadd.f32 %v2098_v37, %v2097_v23  ;;  %v2100_v17 = vpop.f32.mrb[6].mxu0 }
 0x15b   : > { %v808_v27 = vpop.f32.mrb[7].mxu1  ;;  %v2101_v28 = vpop.f32.mrb[7].mxu0 }
 0x15c   : > { %v844_v29 = vmul.f32 0.044715, %v836_v63  ;;  %v837_v30 = vmul.f32 %v829_v25, %v3024_v22  ;;  %v733_v31 = vadd.f32 %v2099_v26, %v3014_v11  ;;  %v2102_v32 = vadd.f32 %v2101_v28, %v2100_v17 }
 0x15d   : > { %v821_v26 = vmul.f32 0.5, %v3024_v22 }
 0x15e   : > { %v852_v34 = vadd.f32 %v844_v29, %v3017_v2  ;;  %v845_v35 = vmul.f32 0.044715, %v837_v30  ;;  %v3034_v36 = vadd.f32 %v2249_v6, %v733_v31  ;;  %v736_v38 = vadd.f32 %v2102_v32, %v3014_v11 }
 0x160   : > { %v860_v39 = vmul.f32 0.7978846, %v852_v34  ;;  %v853_v40 = vadd.f32 %v845_v35, %v3024_v22  ;;  %v830_v41 = vmul.f32 %v3034_v36, %v3034_v36  ;;  %v2103_v42 = vpop.f32.mrb[8].mxu0  ;;  %v3040_v43 = vadd.f32 %v2250_v9, %v736_v38 }
 0x161   : > { %v2104_v44 = vpop.f32.mrb[9].mxu0 }
 0x162   : > { %2426 = vtanh.f32 %v860_v39  ;;  %v861_v45 = vmul.f32 0.7978846, %v853_v40  ;;  %v838_v47 = vmul.f32 %v830_v41, %v3034_v36  ;;  %v2105_v48 = vadd.f32 %v2104_v44, %v2103_v42  ;;  %v2106_v49 = vpop.f32.mrb[10].mxu0  ;;  %v1004_v44 = vld [vmem:[#allocation2] sm:$0xf] }
 0x163   : > { %v831_v50 = vmul.f32 %v3040_v43, %v3040_v43  ;;  %v2107_v52 = vpop.f32.mrb[11].mxu0  ;;  %v822_v39 = vmul.f32 0.5, %v3034_v36 }
 0x164   : > { %2428 = vtanh.f32 %v861_v45  ;;  %v846_v53 = vmul.f32 0.044715, %v838_v47  ;;  %v741_v54 = vadd.f32 %v2105_v48, %v3014_v11  ;;  %v2108_v33 = vadd.f32 %v2107_v52, %v2106_v49 }
 0x165   : > { %v839_v55 = vmul.f32 %v831_v50, %v3040_v43  ;;  %v823_v48 = vmul.f32 0.5, %v3040_v43 }
 0x166   : > { %v854_v56 = vadd.f32 %v846_v53, %v3034_v36  ;;  %v3048_v58 = vadd.f32 %v805_v24, %v741_v54  ;;  %v744_v59 = vadd.f32 %v2108_v33, %v3014_v11  ;;  %v1008_v36 = vld [vmem:[#allocation2 + $0x8] sm:$0x1] }
 0x167   : > { %v847_v1 = vmul.f32 0.044715, %v839_v55 }
 0x168   : > { %v862_v60 = vmul.f32 0.7978846, %v854_v56  ;;  %v832_v61 = vmul.f32 %v3048_v58, %v3048_v58  ;;  %v3053_v62 = vadd.f32 %v808_v27, %v744_v59  ;;  %v2109_v3 = vpop.f32.mrb[12].mxu0 }
 0x169   : > { %v855_v4 = vadd.f32 %v847_v1, %v3040_v43  ;;  %v2110_v5 = vpop.f32.mrb[13].mxu0 }
 0x16a   : > { %2430 = vtanh.f32 %v862_v60  ;;  %v840_v6 = vmul.f32 %v832_v61, %v3048_v58  ;;  %v833_v7 = vmul.f32 %v3053_v62, %v3053_v62  ;;  %v2112_v8 = vpop.f32.mrb[14].mxu0  ;;  %v2111_v10 = vadd.f32 %v2110_v5, %v2109_v3 }
 0x16b   : > { %v863_v9 = vmul.f32 0.7978846, %v855_v4  ;;  %v2113_v12 = vpop.f32.mrb[15].mxu0 }
 0x16c   : > { %v2427_v13 = vpop.eup %2426  ;;  %v848_v15 = vmul.f32 0.044715, %v840_v6  ;;  %v841_v16 = vmul.f32 %v833_v7, %v3053_v62  ;;  %v2114_v18 = vadd.f32 %v2113_v12, %v2112_v8  ;;  %v749_v21 = vadd.f32 %v2111_v10, %v3014_v11 }
 0x16d   : > { %v876_v0 = vadd.f32 1.0, %v2427_v13  ;;  %2432 = vtanh.f32 %v863_v9 }
 0x16e   : > { %v2429_v23 = vpop.eup %2428  ;;  %v856_v24 = vadd.f32 %v848_v15, %v3048_v58  ;;  %v849_v37 = vmul.f32 0.044715, %v841_v16  ;;  %v752_v63 = vadd.f32 %v2114_v18, %v3014_v11  ;;  %v3067_v27 = vadd.f32 %v3020_v20, %v749_v21  ;;  %v1011_v21 = vld [vmem:[#allocation2 + $0xc] sm:$0xf] }
 0x16f   : > { %v884_v25 = vmul.f32 %v876_v0, %v820_v19  ;;  %v877_v17 = vadd.f32 1.0, %v2429_v23  ;;  %v824_v15 = vmul.f32 0.5, %v3048_v58 }
 0x170   : > { %v864_v28 = vmul.f32 0.7978846, %v856_v24  ;;  %v857_v2 = vadd.f32 %v849_v37, %v3053_v62  ;;  %v3071_v29 = vadd.f32 %v3026_v51, %v752_v63  ;;  %v834_v22 = vmul.f32 %v3067_v27, %v3067_v27 }
 0x171   : > { %892 = vst [vmem:[%s3073_s9] sm:$0xff] %v884_v25  ;;  %v2059_v30 = vpack.c.bf16 %v884_v25, %v884_v25  ;;  %v885_v31 = vmul.f32 %v877_v17, %v821_v26  ;;  %v825_v63 = vmul.f32 0.5, %v3053_v62 }
 0x172   : > { %2434 = vtanh.f32 %v864_v28  ;;  %v865_v32 = vmul.f32 0.7978846, %v857_v2  ;;  %v835_v20 = vmul.f32 %v3071_v29, %v3071_v29  ;;  %v842_v51 = vmul.f32 %v834_v22, %v3067_v27  ;;  %v1015_v28 = vld [vmem:[#allocation2 + $0x14] sm:$0x1] }
 0x173   : > { %v925_v34 = vshrl.u32 %v2059_v30, 16  ;;  %893 = vst [vmem:[%s3073_s9 + $0x8] sm:$0xff] %v885_v31  ;;  %v2060_v35 = vpack.c.bf16 %v885_v31, %v885_v31  ;;  %v928_v42 = vshll.u32 %v2059_v30, 16  ;;  %v826_v31 = vmul.f32 0.5, %v3067_v27 }
 0x174   : > { %v2431_v38 = vpop.eup %2430  ;;  %2436 = vtanh.f32 %v865_v32  ;;  %v843_v40 = vmul.f32 %v835_v20, %v3071_v29  ;;  %v850_v49 = vmul.f32 0.044715, %v842_v51 }
 0x175   : > { %v927_v41 = vrot.slane %v925_v34, 7  ;;  %v933_v45 = vshrl.u32 %v2060_v35, 16  ;;  %v878_v47 = vadd.f32 1.0, %v2431_v38  ;;  %v936_v33 = vshll.u32 %v2060_v35, 16 }
 0x176   : > { %v851_v50 = vmul.f32 0.044715, %v843_v40  ;;  %v858_v1 = vadd.f32 %v850_v49, %v3067_v27  ;;  %v827_v38 = vmul.f32 0.5, %v3071_v29 }
 0x177   : > { %v2433_v52 = vpop.eup %2432  ;;  %v930_v53 = vor.u32 %v928_v42, %v927_v41  ;;  %v935_v54 = vrot.slane %v933_v45, 7  ;;  %v886_v55 = vmul.f32 %v878_v47, %v822_v39  ;;  %v931_v56 = vrot.slane %v927_v41, 4 }
 0x178   : > { %v879_v59 = vadd.f32 1.0, %v2433_v52  ;;  %v859_v60 = vadd.f32 %v851_v50, %v3071_v29  ;;  %v866_v6 = vmul.f32 0.7978846, %v858_v1  ;;  %v1018_v52 = vld [vmem:[#allocation2 + $0x18] sm:$0xf] }
 0x179   : > { %v1005_v61 = vsel %vm2925_vm8, %v930_v53, %v1004_v44  ;;  %v938_v43 = vor.u32 %v936_v33, %v935_v54  ;;  %v940_v3 = vrot.slane %v935_v54, 4  ;;  %894 = vst [vmem:[%s3073_s9 + $0x30] sm:$0xff] %v886_v55  ;;  %v2061_v4 = vpack.c.bf16 %v886_v55, %v886_v55 }
 0x17a   : > { %1006 = vst [vmem:[#allocation2] sm:$0xf] %v1005_v61  ;;  %v887_v5 = vmul.f32 %v879_v59, %v823_v48  ;;  %v867_v7 = vmul.f32 0.7978846, %v859_v60  ;;  %2438 = vtanh.f32 %v866_v6  ;;  %v1022_v60 = vld [vmem:[#allocation2 + $0x20] sm:$0x1] }
 0x17b   : > { %v939_v8 = vsel %vm2915_vm7, %v931_v56, %v938_v43  ;;  %v1009_v9 = vsel %vm2857_vm3, %v940_v3, %v1008_v36  ;;  %v942_v10 = vshrl.u32 %v2061_v4, 16  ;;  %v945_v18 = vshll.u32 %v2061_v4, 16 }
 0x17c   : > { %v2435_v12 = vpop.eup %2434  ;;  %1007 = vst [vmem:[#allocation2 + $0x4] sm:$0xf] %v939_v8  ;;  %1010 = vst [vmem:[#allocation2 + $0x8] sm:$0x1] %v1009_v9  ;;  %v2062_v13 = vpack.c.bf16 %v887_v5, %v887_v5  ;;  %2440 = vtanh.f32 %v867_v7 }
 0x17d   : > { %895 = vst [vmem:[%s3073_s9 + $0x38] sm:$0xff] %v887_v5  ;;  %v944_v16 = vrot.slane %v942_v10, 7  ;;  %v880_v19 = vadd.f32 1.0, %v2435_v12 }
 0x17e   : > { %v2437_v0 = vpop.eup %2436  ;;  %v950_v23 = vshrl.u32 %v2062_v13, 16  ;;  %v953_v17 = vshll.u32 %v2062_v13, 16 }
 0x17f   : > { %v947_v24 = vor.u32 %v945_v18, %v944_v16  ;;  %v888_v37 = vmul.f32 %v880_v19, %v824_v15  ;;  %v881_v25 = vadd.f32 1.0, %v2437_v0  ;;  %v948_v22 = vrot.slane %v944_v16, 4 }
 0x180   : > { %v952_v26 = vrot.slane %v950_v23, 7 }
 0x181   : > { %v1012_v58 = vsel %vm2925_vm8, %v947_v24, %v1011_v21  ;;  %896 = vst [vmem:[%s3073_s9 + $0x60] sm:$0xff] %v888_v37  ;;  %v2063_v2 = vpack.c.bf16 %v888_v37, %v888_v37  ;;  %v889_v30 = vmul.f32 %v881_v25, %v825_v63  ;;  %v1032_v34 = vld [vmem:[#allocation2] sm:$0xf] }
 0x182   : > { %1013 = vst [vmem:[#allocation2 + $0xc] sm:$0xf] %v1012_v58  ;;  %v955_v32 = vor.u32 %v953_v17, %v952_v26  ;;  %v957_v20 = vrot.slane %v952_v26, 4  ;;  %v1044_v35 = vld [vmem:[#allocation2] sm:$0xe] }
 0x183   : > { %v959_v62 = vshrl.u32 %v2063_v2, 16  ;;  %897 = vst [vmem:[%s3073_s9 + $0x68] sm:$0xff] %v889_v30  ;;  %v2064_v51 = vpack.c.bf16 %v889_v30, %v889_v30  ;;  %v1033_v39 = vld [vmem:[#allocation2 + $0x4] sm:$0xf]  ;;  %v962_v47 = vshll.u32 %v2063_v2, 16  ;;  %v2474_v30 = vld [vmem:[#allocation6] sm:$0xff]  }
 0x184   : > { %v956_v40 = vsel %vm2915_vm7, %v948_v22, %v955_v32  ;;  %v1016_v41 = vsel %vm2857_vm3, %v957_v20, %v1015_v28  ;;  %v2004_v42 = vcombine.low %v1032_v34, %v1033_v39  ;;  %v2403_v27 = vld [vmem:[#allocation2 + $0x8] ss:$0 sps:$4 sm:$0x11]   ;;  %v2012_v44 = vcombine.low %v1044_v35, %v1033_v39  ;;  %v2439_v50 = vpop.eup %2438  ;;  %v2475_v35 = vld [vmem:[#allocation6 + $0x48] sm:$0xff]  }
 0x185   : > { %1014 = vst [vmem:[#allocation2 + $0x10] sm:$0xf] %v956_v40  ;;  %1017 = vst [vmem:[#allocation2 + $0x14] sm:$0x1] %v1016_v41  ;;  %v961_v45 = vrot.slane %v959_v62, 7  ;;  %v967_v48 = vshrl.u32 %v2064_v51, 16 }
 0x186   : > { %v970_v49 = vshll.u32 %v2064_v51, 16  ;;  %v1148_v53 = vrot.slane %v2012_v44, 1  ;;  %v1149_v29 = vrot.slane %v2403_v27, 1  ;;  %v1085_v54 = vshrl.u32 %v2004_v42, 16  ;;  %v2441_v55 = vpop.eup %2440  ;;  %v1029_v51 = vld [vmem:[#allocation2 + $0x2c] sm:$0x1] }
 0x187   : > { %v1087_v33 = vshll.u32 %v2004_v42, 16  ;;  %v964_v56 = vor.u32 %v962_v47, %v961_v45  ;;  %v965_v36 = vrot.slane %v961_v45, 4  ;;  %v969_v59 = vrot.slane %v967_v48, 7 }
 0x188   : > { %v882_v1 = vadd.f32 1.0, %v2439_v50  ;;  %v883_v61 = vadd.f32 1.0, %v2441_v55  ;;  %v1150_v43 = vsel %vm529_vm10, %v1148_v53, %v1149_v29  ;;  %v1092_v4 = vshll.u32 %v2403_v27, 16  ;;  %v2477_v50 = vld [vmem:[#allocation6 + $0x80] sm:$0xff]  }
 0x189   : > { %v1089_v3 = vrot.slane %v1087_v33, 1  ;;  %v1019_v5 = vsel %vm2925_vm8, %v964_v56, %v1018_v52  ;;  %v972_v6 = vor.u32 %v970_v49, %v969_v59  ;;  %v974_v7 = vrot.slane %v969_v59, 4  ;;  %2271 = vmatprep.mubr.bf16.mxu1 %v1150_v43  ;;  %v1045_v18 = vld [vmem:[#allocation2 + $0xc] sm:$0xe]  ;;  %v2476_v49 = vld [vmem:[#allocation6 + $0x8] sm:$0xff]   ;;  %v2478_v56 = vld [vmem:[#allocation6 + $0x50] sm:$0xff]  }
 0x18a   : > { %v890_v8 = vmul.f32 %v882_v1, %v826_v31  ;;  %1020 = vst [vmem:[#allocation2 + $0x18] sm:$0xf] %v1019_v5  ;;  %v891_v9 = vmul.f32 %v883_v61, %v827_v38  ;;  %v1094_v12 = vrot.slane %v1092_v4, 1  ;;  %v1034_v23 = vld [vmem:[#allocation2 + $0xc] sm:$0xf]  ;;  %v2479_v59 = vld [vmem:[#allocation6 + $0x88] sm:$0xff]  }
 0x18b   : > { %v1090_v10 = vor.u32 %v1089_v3, %v1085_v54  ;;  %v973_v13 = vsel %vm2915_vm7, %v965_v36, %v972_v6  ;;  %v1023_v15 = vsel %vm2857_vm3, %v974_v7, %v1022_v60  ;;  %v1025_v31 = vld [vmem:[#allocation2 + $0x24] sm:$0xf] }
 0x18c   : > { %898 = vst [vmem:[%s3073_s9 + $0x90] sm:$0xff] %v890_v8  ;;  %v2065_v16 = vpack.c.bf16 %v890_v8, %v890_v8  ;;  %1021 = vst [vmem:[#allocation2 + $0x1c] sm:$0xf] %v973_v13  ;;  %v2066_v19 = vpack.c.bf16 %v891_v9, %v891_v9  ;;  %v1035_v21 = vld [vmem:[#allocation2 + $0x10] sm:$0xf]  ;;  %v2480_v4 = vld [vmem:[#allocation6 + $0x10] sm:$0xff]  }
 0x18d   : > { %1024 = vst [vmem:[#allocation2 + $0x20] sm:$0x1] %v1023_v15  ;;  %899 = vst [vmem:[%s3073_s9 + $0x98] sm:$0xff] %v891_v9  ;;  %v1095_v0 = vsel %vm464_vm9, %v1090_v10, %v1094_v12  ;;  %v2405_v37 = vld [vmem:[#allocation2 + $0x14] ss:$0 sps:$4 sm:$0x11]   ;;  %v2013_v63 = vcombine.low %v1045_v18, %v1035_v21  ;;  %v2005_v25 = vcombine.low %v1034_v23, %v1035_v21 }
 0x18e   : > { %v976_v24 = vshrl.u32 %v2065_v16, 16  ;;  %1196 = vmatprep.mubr.bf16.mxu0 %v1095_v0  ;;  %v984_v26 = vshrl.u32 %v2066_v19, 16  ;;  %v979_v58 = vshll.u32 %v2065_v16, 16  ;;  %v1152_v2 = vrot.slane %v2405_v37, 1  ;;  %v2481_v8 = vld [vmem:[#allocation6 + $0x58] sm:$0xff]   ;;  %v2482_v9 = vld [vmem:[#allocation6 + $0x90] sm:$0xff]  }
 0x18f   : > { %1197 = vmatmul.mubr.bf16.vlgmr.msra.gmra.mrb[16].mxu0 %v2004_v42  ;;  %v1151_v28 = vrot.slane %v2013_v63, 1  ;;  %v987_v32 = vshll.u32 %v2066_v19, 16  ;;  %v1099_v20 = vshll.u32 %v2005_v25, 16  ;;  %v1104_v34 = vshll.u32 %v2405_v37, 16  ;;  %v2483_v15 = vld [vmem:[#allocation6 + $0x18] sm:$0xff]   ;;  %v2484_v0 = vld [vmem:[#allocation6 + $0x60] sm:$0xff]  }
 0x190   : > { %v978_v17 = vrot.slane %v976_v24, 7  ;;  %2180 = vmatpush3.bf16.msra.mxu0 %v2474_v30  ;;  %v986_v22 = vrot.slane %v984_v26, 7  ;;  %v1097_v39 = vshrl.u32 %v2005_v25, 16  ;;  %v2485_v37 = vld [vmem:[#allocation6 + $0x98] sm:$0xff]  }
 0x191   : > { %2181 = vmatprep.subr.bf16.mxu0 %v2475_v35  ;;  %v1153_v38 = vsel %vm529_vm10, %v1151_v28, %v1152_v2  ;;  %v1101_v27 = vrot.slane %v1099_v20, 1  ;;  %v1036_v44 = vld [vmem:[#allocation2 + $0x18] sm:$0xf]  ;;  %v1106_v47 = vrot.slane %v1104_v34, 1  ;;  %v2490_v35 = vld [vmem:[#allocation6 + $0x70] sm:$0xff]  }
 0x192   : > { %v981_v62 = vor.u32 %v979_v58, %v978_v17  ;;  %v982_v40 = vrot.slane %v978_v17, 4  ;;  %v989_v41 = vor.u32 %v987_v32, %v986_v22  ;;  %v991_v42 = vrot.slane %v986_v22, 4  ;;  %2272 = vmatmul.mubr.bf16.vlgmr.msra.gmra.mrb[8].mxu1 %v1153_v38  ;;  %v1046_v54 = vld [vmem:[#allocation2 + $0x18] sm:$0xe]  ;;  %v2486_v17 = vld [vmem:[#allocation6 + $0x20] sm:$0xff]   ;;  %v2492_v38 = vld [vmem:[#allocation6 + $0x30] sm:$0xff]  }
 0x193   : > { %v1037_v48 = vld [vmem:[#allocation2 + $0x1c] sm:$0xf]  ;;  %2280 = vmatpush3.bf16.msra.mxu1 %v2477_v50  ;;  %v1102_v29 = vor.u32 %v1101_v27, %v1097_v39  ;;  %v2488_v22 = vld [vmem:[#allocation6 + $0xa0] sm:$0xff]   ;;  %v2493_v39 = vld [vmem:[#allocation6 + $0x78] sm:$0xff]  }
 0x194   : > { %v1026_v45 = vsel %vm2925_vm8, %v981_v62, %v1025_v31  ;;  %2182 = vmatpush3.bf16.msra.mxu0 %v2476_v49  ;;  %v990_v52 = vsel %vm2915_vm7, %v982_v40, %v989_v41  ;;  %v1030_v53 = vsel %vm2857_vm3, %v991_v42, %v1029_v51  ;;  %v2006_v33 = vcombine.low %v1036_v44, %v1037_v48  ;;  %v2409_v55 = vld [vmem:[#allocation2 + $0x20] ss:$0 sps:$4 sm:$0x11]   ;;  %v2487_v31 = vld [vmem:[#allocation6 + $0x68] sm:$0xff]   ;;  %v2495_v41 = vld [vmem:[#allocation6 + $0x38] sm:$0xff]  }
 0x195   : > { %1027 = vst [vmem:[#allocation2 + $0x24] sm:$0xf] %v1026_v45  ;;  %2183 = vmatprep.subr.bf16.mxu0 %v2478_v56  ;;  %1028 = vst [vmem:[#allocation2 + $0x28] sm:$0xf] %v990_v52  ;;  %v2014_v36 = vcombine.low %v1046_v54, %v1037_v48  ;;  %2281 = vmatprep.subr.bf16.mxu1 %v2479_v59  ;;  %v1107_v1 = vsel %vm464_vm9, %v1102_v29, %v1106_v47  ;;  %v1155_v60 = vrot.slane %v2409_v55, 1  ;;  %v2489_v34 = vld [vmem:[#allocation6 + $0x28] sm:$0xff]  }
 0x196   : > { %1031 = vst [vmem:[#allocation2 + $0x2c] sm:$0x1] %v1030_v53  ;;  %v1111_v61 = vshll.u32 %v2006_v33, 16  ;;  %1204 = vmatprep.mubr.bf16.mxu0 %v1107_v1  ;;  %v1116_v3 = vshll.u32 %v2409_v55, 16  ;;  %v1109_v5 = vshrl.u32 %v2006_v33, 16  ;;  %v2491_v51 = vld [vmem:[#allocation6 + $0xa8] sm:$0xff]  }
 0x197   : > { %v1154_v43 = vrot.slane %v2014_v36, 1  ;;  %1205 = vmatmul.mubr.bf16.gmra.mrb[20].mxu0 %v2005_v25  ;;  %2282 = vmatpush3.bf16.msra.mxu1 %v2479_v59  ;;  %v2494_v40 = vld [vmem:[#allocation6 + $0xb0] sm:$0xff]   ;;  %v2496_v42 = vld [vmem:[#allocation6 + $0xb8] sm:$0xff]  }
 0x198   : > { %2184 = vmatpush3.bf16.msra.mxu0 %v2480_v4  ;;  %v1113_v6 = vrot.slane %v1111_v61, 1  ;;  %2283 = vmatprep.subr.bf16.mxu1 %v2482_v9  ;;  %v1118_v12 = vrot.slane %v1116_v3, 1 }
 0x199   : > { %v1156_v7 = vsel %vm529_vm10, %v1154_v43, %v1155_v60  ;;  %2185 = vmatprep.subr.bf16.mxu0 %v2481_v8 }
 0x19a   : > { %2275 = vmatprep.mubr.bf16.mxu1 %v1156_v7  ;;  %v1114_v10 = vor.u32 %v1113_v6, %v1109_v5 }
 0x19b   : > { %2284 = vmatpush3.bf16.msra.mxu1 %v2482_v9 }
 0x19c   : > { %v1038_v13 = vld [vmem:[#allocation2 + $0x24] sm:$0xf]  ;;  %2186 = vmatpush3.bf16.msra.mxu0 %v2483_v15  ;;  %v1119_v16 = vsel %vm464_vm9, %v1114_v10, %v1118_v12  ;;  %v1039_v18 = vld [vmem:[#allocation2 + $0x28] sm:$0xf]  ;;  %2285 = vmatprep.subr.bf16.mxu1 %v2485_v37 }
 0x19d   : > { %v1047_v19 = vld [vmem:[#allocation2 + $0x24] sm:$0xe]  ;;  %2187 = vmatprep.subr.bf16.mxu0 %v2484_v0  ;;  %1212 = vmatprep.mubr.bf16.mxu0 %v1119_v16  ;;  %v2007_v21 = vcombine.low %v1038_v13, %v1039_v18  ;;  %v2412_v23 = vld [vmem:[#allocation2 + $0x2c] ss:$0 sps:$4 sm:$0x11]  }
 0x19e   : > { %v2015_v24 = vcombine.low %v1047_v19, %v1039_v18  ;;  %v1158_v25 = vrot.slane %v2412_v23, 1  ;;  %v1128_v58 = vshll.u32 %v2412_v23, 16 }
 0x19f   : > { %v1123_v26 = vshll.u32 %v2007_v21, 16  ;;  %1213 = vmatmul.mubr.bf16.gmra.mrb[24].mxu0 %v2006_v33  ;;  %2286 = vmatpush3.bf16.msra.mxu1 %v2485_v37  ;;  %v1121_v2 = vshrl.u32 %v2007_v21, 16 }
 0x1a0   : > { %v1157_v63 = vrot.slane %v2015_v24, 1  ;;  %2188 = vmatpush3.bf16.msra.mxu0 %v2486_v17  ;;  %2287 = vmatprep.subr.bf16.mxu1 %v2488_v22  ;;  %v1130_v20 = vrot.slane %v1128_v58, 1 }
 0x1a1   : > { %v1125_v30 = vrot.slane %v1123_v26, 1  ;;  %2189 = vmatprep.subr.bf16.mxu0 %v2487_v31 }
 0x1a2   : > { %v1159_v28 = vsel %vm529_vm10, %v1157_v63, %v1158_v25 }
 0x1a3   : > { %2276 = vmatmul.mubr.bf16.gmra.mrb[12].mxu1 %v1159_v28  ;;  %v1126_v32 = vor.u32 %v1125_v30, %v1121_v2 }
 0x1a4   : > { %2190 = vmatpush3.bf16.msra.mxu0 %v2489_v34  ;;  %2288 = vmatpush3.bf16.msra.mxu1 %v2488_v22 }
 0x1a5   : > { %2191 = vmatprep.subr.bf16.mxu0 %v2490_v35  ;;  %v1131_v62 = vsel %vm464_vm9, %v1126_v32, %v1130_v20  ;;  %2289 = vmatprep.subr.bf16.mxu1 %v2491_v51 }
 0x1a6   : > { %1220 = vmatprep.mubr.bf16.mxu0 %v1131_v62 }
 0x1a7   : > { %1221 = vmatmul.mubr.bf16.gmra.mrb[28].mxu0 %v2007_v21 }
 0x1a8   : > { %2192 = vmatpush3.bf16.msra.mxu0 %v2492_v38  ;;  %2290 = vmatpush3.bf16.msra.mxu1 %v2491_v51 }
 0x1a9   : > { %2193 = vmatprep.subr.bf16.mxu0 %v2493_v39  ;;  %2291 = vmatprep.subr.bf16.mxu1 %v2494_v40 }
 0x1ac   : > { %2194 = vmatpush3.bf16.msra.mxu0 %v2495_v41  ;;  %2292 = vmatpush3.bf16.msra.mxu1 %v2494_v40 }
 0x1ad   : > { %2293 = vmatprep.subr.bf16.mxu1 %v2496_v42 }
 0x1b0   : > { %2294 = vmatpush3.bf16.msra.mxu1 %v2496_v42 }
 0x262   : > { %v2143_v27 = vpop.f32.mrb[16].mxu0 }
 0x263   : > { %v2144_v44 = vpop.f32.mrb[17].mxu0 }
 0x264   : > { %v2145_v45 = vadd.f32 %v2144_v44, %v2143_v27  ;;  %v2146_v47 = vpop.f32.mrb[18].mxu0 }
 0x265   : > { %v2147_v48 = vpop.f32.mrb[19].mxu0  ;;  %v2273_v50 = vpop.f32.mrb[8].mxu1 }
 0x266   : > { %v2148_v49 = vadd.f32 %v2147_v48, %v2146_v47  ;;  %v1199_v52 = vadd.f32 %v2145_v45, %v3014_v11  ;;  %v1263_v53 = vpop.f32.mrb[9].mxu1 }
 0x267   : > { %v2274_v54 = vpop.f32.mrb[10].mxu1 }
 0x268   : > { %v1264_v29 = vadd.f32 %v1263_v53, %v1199_v52  ;;  %v1202_v33 = vadd.f32 %v2148_v49, %v3014_v11  ;;  %v1266_v55 = vpop.f32.mrb[11].mxu1 }
 0x26a   : > { %v1302_v56 = vmul.f32 %v1264_v29, %v1264_v29  ;;  %v1267_v36 = vadd.f32 %v1266_v55, %v1202_v33  ;;  %v2149_v60 = vpop.f32.mrb[20].mxu0  ;;  %v1294_v48 = vmul.f32 0.5, %v1264_v29 }
 0x26b   : > { %v2150_v61 = vpop.f32.mrb[21].mxu0 }
 0x26c   : > { %v1310_v59 = vmul.f32 %v1302_v56, %v1264_v29  ;;  %v1303_v1 = vmul.f32 %v1267_v36, %v1267_v36  ;;  %v2151_v4 = vadd.f32 %v2150_v61, %v2149_v60  ;;  %v2152_v5 = vpop.f32.mrb[22].mxu0  ;;  %v1295_v33 = vmul.f32 0.5, %v1267_v36 }
 0x26d   : > { %v2153_v6 = vpop.f32.mrb[23].mxu0 }
 0x26e   : > { %v1318_v43 = vmul.f32 0.044715, %v1310_v59  ;;  %v1311_v3 = vmul.f32 %v1303_v1, %v1267_v36  ;;  %v1207_v9 = vadd.f32 %v2151_v4, %v3014_v11  ;;  %v2154_v10 = vadd.f32 %v2153_v6, %v2152_v5 }
 0x270   : > { %v1326_v7 = vadd.f32 %v1318_v43, %v1264_v29  ;;  %v1319_v8 = vmul.f32 0.044715, %v1311_v3  ;;  %v3132_v15 = vadd.f32 %v2273_v50, %v1207_v9  ;;  %v1210_v16 = vadd.f32 %v2154_v10, %v3014_v11 }
 0x272   : > { %v1334_v12 = vmul.f32 0.7978846, %v1326_v7  ;;  %v1327_v13 = vadd.f32 %v1319_v8, %v1267_v36  ;;  %v1304_v19 = vmul.f32 %v3132_v15, %v3132_v15  ;;  %v2155_v0 = vpop.f32.mrb[24].mxu0  ;;  %v3137_v21 = vadd.f32 %v2274_v54, %v1210_v16 }
 0x273   : > { %v2156_v23 = vpop.f32.mrb[25].mxu0 }
 0x274   : > { %2442 = vtanh.f32 %v1334_v12  ;;  %v1335_v18 = vmul.f32 0.7978846, %v1327_v13  ;;  %v1312_v24 = vmul.f32 %v1304_v19, %v3132_v15  ;;  %v2157_v37 = vadd.f32 %v2156_v23, %v2155_v0  ;;  %v2158_v63 = vpop.f32.mrb[26].mxu0 }
 0x275   : > { %v1305_v26 = vmul.f32 %v3137_v21, %v3137_v21  ;;  %v2159_v17 = vpop.f32.mrb[27].mxu0  ;;  %v1296_v23 = vmul.f32 0.5, %v3132_v15 }
 0x276   : > { %2444 = vtanh.f32 %v1335_v18  ;;  %v2277_v25 = vpop.f32.mrb[12].mxu1  ;;  %v1320_v28 = vmul.f32 0.044715, %v1312_v24  ;;  %v2160_v2 = vadd.f32 %v2159_v17, %v2158_v63  ;;  %v1215_v30 = vadd.f32 %v2157_v37, %v3014_v11 }
 0x277   : > { %v1279_v58 = vpop.f32.mrb[13].mxu1  ;;  %v1313_v22 = vmul.f32 %v1305_v26, %v3137_v21 }
 0x278   : > { %v2278_v31 = vpop.f32.mrb[14].mxu1  ;;  %v1328_v20 = vadd.f32 %v1320_v28, %v3132_v15  ;;  %v3145_v34 = vadd.f32 %v1279_v58, %v1215_v30  ;;  %v1218_v35 = vadd.f32 %v2160_v2, %v3014_v11  ;;  %v1479_v58 = vld [vmem:[#allocation2] sm:$0xf] }
 0x279   : > { %v1282_v32 = vpop.f32.mrb[15].mxu1  ;;  %v1321_v62 = vmul.f32 0.044715, %v1313_v22 }
 0x27a   : > { %v1336_v51 = vmul.f32 0.7978846, %v1328_v20  ;;  %v1306_v38 = vmul.f32 %v3145_v34, %v3145_v34  ;;  %v3150_v39 = vadd.f32 %v1282_v32, %v1218_v35  ;;  %v2161_v40 = vpop.f32.mrb[28].mxu0  ;;  %v1483_v20 = vld [vmem:[#allocation2 + $0x8] sm:$0x1]  ;;  %v1297_v35 = vmul.f32 0.5, %v3137_v21 }
 0x27b   : > { %v1329_v41 = vadd.f32 %v1321_v62, %v3137_v21  ;;  %v2162_v42 = vpop.f32.mrb[29].mxu0 }
 0x27c   : > { %2446 = vtanh.f32 %v1336_v51  ;;  %v1314_v44 = vmul.f32 %v1306_v38, %v3145_v34  ;;  %v1307_v45 = vmul.f32 %v3150_v39, %v3150_v39  ;;  %v2164_v47 = vpop.f32.mrb[30].mxu0  ;;  %v2163_v52 = vadd.f32 %v2162_v42, %v2161_v40 }
 0x27d   : > { %v1337_v50 = vmul.f32 0.7978846, %v1329_v41  ;;  %v2165_v53 = vpop.f32.mrb[31].mxu0 }
 0x27e   : > { %v2443_v27 = vpop.eup %2442  ;;  %v1322_v55 = vmul.f32 0.044715, %v1314_v44  ;;  %v1315_v56 = vmul.f32 %v1307_v45, %v3150_v39  ;;  %v2166_v59 = vadd.f32 %v2165_v53, %v2164_v47  ;;  %v1223_v61 = vadd.f32 %v2163_v52, %v3014_v11 }
 0x27f   : > { %v1350_v49 = vadd.f32 1.0, %v2443_v27  ;;  %2448 = vtanh.f32 %v1337_v50  ;;  %v1298_v53 = vmul.f32 0.5, %v3145_v34 }
 0x280   : > { %v2445_v54 = vpop.eup %2444  ;;  %v1330_v43 = vadd.f32 %v1322_v55, %v3145_v34  ;;  %v1323_v29 = vmul.f32 0.044715, %v1315_v56  ;;  %v1226_v3 = vadd.f32 %v2166_v59, %v3014_v11  ;;  %v3161_v6 = vadd.f32 %v2277_v25, %v1223_v61  ;;  %v1486_v59 = vld [vmem:[#allocation2 + $0xc] sm:$0xf] }
 0x281   : > { %v1358_v1 = vmul.f32 %v1350_v49, %v1294_v48  ;;  %v1351_v60 = vadd.f32 1.0, %v2445_v54 }
 0x282   : > { %v1338_v36 = vmul.f32 0.7978846, %v1330_v43  ;;  %v1331_v7 = vadd.f32 %v1323_v29, %v3150_v39  ;;  %v3164_v8 = vadd.f32 %v2278_v31, %v1226_v3  ;;  %v1308_v13 = vmul.f32 %v3161_v6, %v3161_v6 }
 0x283   : > { %2016 = vst [vmem:[%s3073_s9 + $0x10] sm:$0xff] %v1358_v1  ;;  %v2067_v4 = vpack.c.bf16 %v1358_v1, %v1358_v1  ;;  %v1359_v5 = vmul.f32 %v1351_v60, %v1295_v33  ;;  %v1299_v60 = vmul.f32 0.5, %v3150_v39 }
 0x284   : > { %2450 = vtanh.f32 %v1338_v36  ;;  %v1339_v12 = vmul.f32 0.7978846, %v1331_v7  ;;  %v1309_v19 = vmul.f32 %v3164_v8, %v3164_v8  ;;  %v1316_v24 = vmul.f32 %v1308_v13, %v3161_v6 }
 0x285   : > { %v1400_v9 = vshrl.u32 %v2067_v4, 16  ;;  %2017 = vst [vmem:[%s3073_s9 + $0x18] sm:$0xff] %v1359_v5  ;;  %v2068_v10 = vpack.c.bf16 %v1359_v5, %v1359_v5  ;;  %v1403_v11 = vshll.u32 %v2067_v4, 16 }
 0x286   : > { %v2447_v0 = vpop.eup %2446  ;;  %2452 = vtanh.f32 %v1339_v12  ;;  %v1324_v28 = vmul.f32 0.044715, %v1316_v24  ;;  %v1317_v2 = vmul.f32 %v1309_v19, %v3164_v8 }
 0x287   : > { %v1402_v16 = vrot.slane %v1400_v9, 7  ;;  %v1408_v18 = vshrl.u32 %v2068_v10, 16  ;;  %v1411_v25 = vshll.u32 %v2068_v10, 16  ;;  %v1352_v26 = vadd.f32 1.0, %v2447_v0 }
 0x288   : > { %v1332_v51 = vadd.f32 %v1324_v28, %v3161_v6  ;;  %v1325_v38 = vmul.f32 0.044715, %v1317_v2 }
 0x289   : > { %v1405_v37 = vor.u32 %v1403_v11, %v1402_v16  ;;  %v1410_v63 = vrot.slane %v1408_v18, 7  ;;  %v1406_v17 = vrot.slane %v1402_v16, 4  ;;  %v2449_v30 = vpop.eup %2448  ;;  %v1360_v15 = vmul.f32 %v1352_v26, %v1296_v23  ;;  %v1490_v11 = vld [vmem:[#allocation2 + $0x14] sm:$0x1] }
 0x28a   : > { %v1353_v62 = vadd.f32 1.0, %v2449_v30  ;;  %v1340_v44 = vmul.f32 0.7978846, %v1332_v51  ;;  %v1333_v45 = vadd.f32 %v1325_v38, %v3164_v8 }
 0x28b   : > { %v1480_v31 = vsel %vm2925_vm8, %v1405_v37, %v1479_v58  ;;  %v1413_v22 = vor.u32 %v1411_v25, %v1410_v63  ;;  %v1415_v32 = vrot.slane %v1410_v63, 4  ;;  %2018 = vst [vmem:[%s3073_s9 + $0x40] sm:$0xff] %v1360_v15  ;;  %v2069_v42 = vpack.c.bf16 %v1360_v15, %v1360_v15 }
 0x28c   : > { %1481 = vst [vmem:[#allocation2] sm:$0xf] %v1480_v31  ;;  %v1361_v27 = vmul.f32 %v1353_v62, %v1297_v35  ;;  %2454 = vtanh.f32 %v1340_v44  ;;  %v1341_v49 = vmul.f32 0.7978846, %v1333_v45  ;;  %v1300_v58 = vmul.f32 0.5, %v3161_v6 }
 0x28d   : > { %v1414_v40 = vsel %vm2915_vm7, %v1406_v17, %v1413_v22  ;;  %v1484_v41 = vsel %vm2857_vm3, %v1415_v32, %v1483_v20  ;;  %v1417_v47 = vshrl.u32 %v2069_v42, 16  ;;  %v1420_v52 = vshll.u32 %v2069_v42, 16  ;;  %v1493_v62 = vld [vmem:[#allocation2 + $0x18] sm:$0xf] }
 0x28e   : > { %1482 = vst [vmem:[#allocation2 + $0x4] sm:$0xf] %v1414_v40  ;;  %1485 = vst [vmem:[#allocation2 + $0x8] sm:$0x1] %v1484_v41  ;;  %v2451_v21 = vpop.eup %2450  ;;  %v2070_v48 = vpack.c.bf16 %v1361_v27, %v1361_v27  ;;  %2456 = vtanh.f32 %v1341_v49  ;;  %v1301_v44 = vmul.f32 0.5, %v3164_v8 }
 0x28f   : > { %2019 = vst [vmem:[%s3073_s9 + $0x48] sm:$0xff] %v1361_v27  ;;  %v1419_v50 = vrot.slane %v1417_v47, 7  ;;  %v1354_v54 = vadd.f32 1.0, %v2451_v21  ;;  %v1497_v27 = vld [vmem:[#allocation2 + $0x20] sm:$0x1] }
 0x290   : > { %v2453_v33 = vpop.eup %2452  ;;  %v1425_v55 = vshrl.u32 %v2070_v48, 16  ;;  %v1428_v3 = vshll.u32 %v2070_v48, 16 }
 0x291   : > { %v1422_v56 = vor.u32 %v1420_v52, %v1419_v50  ;;  %v1362_v1 = vmul.f32 %v1354_v54, %v1298_v53  ;;  %v1355_v61 = vadd.f32 1.0, %v2453_v33  ;;  %v1423_v43 = vrot.slane %v1419_v50, 4 }
 0x292   : > { %v1427_v29 = vrot.slane %v1425_v55, 7 }
 0x293   : > { %v1507_v4 = vld [vmem:[#allocation2] sm:$0xf]  ;;  %v1487_v5 = vsel %vm2925_vm8, %v1422_v56, %v1486_v59  ;;  %2020 = vst [vmem:[%s3073_s9 + $0x70] sm:$0xff] %v1362_v1  ;;  %v2071_v34 = vpack.c.bf16 %v1362_v1, %v1362_v1  ;;  %v1363_v36 = vmul.f32 %v1355_v61, %v1299_v60 }
 0x294   : > { %v1519_v9 = vld [vmem:[#allocation2] sm:$0xe]  ;;  %1488 = vst [vmem:[#allocation2 + $0xc] sm:$0xf] %v1487_v5  ;;  %v1430_v10 = vor.u32 %v1428_v3, %v1427_v29  ;;  %v1432_v12 = vrot.slane %v1427_v29, 4 }
 0x295   : > { %v1508_v7 = vld [vmem:[#allocation2 + $0x4] sm:$0xf]  ;;  %v2415_v16 = vld [vmem:[#allocation2 + $0x8] ss:$0 sps:$4 sm:$0x11]   ;;  %v1434_v18 = vshrl.u32 %v2071_v34, 16  ;;  %v2072_v19 = vpack.c.bf16 %v1363_v36, %v1363_v36 }
 0x296   : > { %v2032_v13 = vcombine.low %v1507_v4, %v1508_v7  ;;  %v2040_v39 = vcombine.low %v1519_v9, %v1508_v7  ;;  %2021 = vst [vmem:[%s3073_s9 + $0x78] sm:$0xff] %v1363_v36  ;;  %v1431_v0 = vsel %vm2915_vm7, %v1423_v43, %v1430_v10  ;;  %v1491_v23 = vsel %vm2857_vm3, %v1432_v12, %v1490_v11  ;;  %v2455_v17 = vpop.eup %2454  ;;  %v1500_v7 = vld [vmem:[#allocation2 + $0x24] sm:$0xf] }
 0x297   : > { %v1624_v37 = vrot.slane %v2415_v16, 1  ;;  %1489 = vst [vmem:[#allocation2 + $0x10] sm:$0xf] %v1431_v0  ;;  %1492 = vst [vmem:[#allocation2 + $0x14] sm:$0x1] %v1491_v23  ;;  %v1436_v63 = vrot.slane %v1434_v18, 7 }
 0x298   : > { %v1623_v24 = vrot.slane %v2040_v39, 1  ;;  %v1437_v25 = vshll.u32 %v2071_v34, 16  ;;  %v1442_v26 = vshrl.u32 %v2072_v19, 16  ;;  %v1562_v2 = vshll.u32 %v2032_v13, 16  ;;  %v2457_v20 = vpop.eup %2456 }
 0x299   : > { %v1567_v30 = vshll.u32 %v2415_v16, 16  ;;  %v1445_v32 = vshll.u32 %v2072_v19, 16  ;;  %v1356_v15 = vadd.f32 1.0, %v2455_v17  ;;  %v1440_v35 = vrot.slane %v1436_v63, 4  ;;  %v1504_v17 = vld [vmem:[#allocation2 + $0x2c] sm:$0x1] }
 0x29a   : > { %v1625_v28 = vsel %vm529_vm10, %v1623_v24, %v1624_v37  ;;  %v1439_v31 = vor.u32 %v1437_v25, %v1436_v63  ;;  %v1444_v22 = vrot.slane %v1442_v26, 7  ;;  %v1560_v51 = vshrl.u32 %v2032_v13, 16 }
 0x29b   : > { %2295 = vmatprep.mubr.bf16.mxu1 %v1625_v28  ;;  %v1564_v38 = vrot.slane %v1562_v2, 1  ;;  %v1364_v42 = vmul.f32 %v1356_v15, %v1300_v58  ;;  %v1357_v45 = vadd.f32 1.0, %v2457_v20  ;;  %v1569_v21 = vrot.slane %v1567_v30, 1  ;;  %v1520_v52 = vld [vmem:[#allocation2 + $0xc] sm:$0xe] }
 0x29c   : > { %v1494_v40 = vsel %vm2925_vm8, %v1439_v31, %v1493_v62  ;;  %v1447_v41 = vor.u32 %v1445_v32, %v1444_v22  ;;  %v1449_v6 = vrot.slane %v1444_v22, 4  ;;  %v1509_v8 = vld [vmem:[#allocation2 + $0xc] sm:$0xf] }
 0x29d   : > { %1495 = vst [vmem:[#allocation2 + $0x18] sm:$0xf] %v1494_v40  ;;  %v1565_v47 = vor.u32 %v1564_v38, %v1560_v51  ;;  %2022 = vst [vmem:[%s3073_s9 + $0xa0] sm:$0xff] %v1364_v42  ;;  %v2073_v50 = vpack.c.bf16 %v1364_v42, %v1364_v42  ;;  %v1365_v53 = vmul.f32 %v1357_v45, %v1301_v44 }
 0x29e   : > { %v1448_v48 = vsel %vm2915_vm7, %v1440_v35, %v1447_v41  ;;  %v1498_v49 = vsel %vm2857_vm3, %v1449_v6, %v1497_v27  ;;  %v1510_v33 = vld [vmem:[#allocation2 + $0x10] sm:$0xf]  ;;  %v2417_v56 = vld [vmem:[#allocation2 + $0x14] ss:$0 sps:$4 sm:$0x11]  }
 0x29f   : > { %1496 = vst [vmem:[#allocation2 + $0x1c] sm:$0xf] %v1448_v48  ;;  %1499 = vst [vmem:[#allocation2 + $0x20] sm:$0x1] %v1498_v49  ;;  %v1570_v54 = vsel %vm464_vm9, %v1565_v47, %v1569_v21  ;;  %v1451_v55 = vshrl.u32 %v2073_v50, 16  ;;  %v2041_v59 = vcombine.low %v1520_v52, %v1510_v33  ;;  %v2033_v1 = vcombine.low %v1509_v8, %v1510_v33 }
 0x2a0   : > { %1671 = vmatprep.mubr.bf16.mxu0 %v1570_v54  ;;  %2023 = vst [vmem:[%s3073_s9 + $0xa8] sm:$0xff] %v1365_v53  ;;  %v2074_v60 = vpack.c.bf16 %v1365_v53, %v1365_v53  ;;  %v1454_v43 = vshll.u32 %v2073_v50, 16  ;;  %v1627_v3 = vrot.slane %v2417_v56, 1  ;;  %v1579_v34 = vshll.u32 %v2417_v56, 16 }
 0x2a1   : > { %1672 = vmatmul.mubr.bf16.vlgmr.msra.gmra.mrb[32].mxu0 %v2032_v13  ;;  %v1453_v61 = vrot.slane %v1451_v55, 7  ;;  %v1626_v29 = vrot.slane %v2041_v59, 1  ;;  %v1574_v5 = vshll.u32 %v2033_v1, 16  ;;  %v1572_v16 = vshrl.u32 %v2033_v1, 16 }
 0x2a2   : > { %v1459_v4 = vshrl.u32 %v2074_v60, 16  ;;  %v1462_v12 = vshll.u32 %v2074_v60, 16  ;;  %v1581_v19 = vrot.slane %v1579_v34, 1  ;;  %v3222_v60 = vld [vmem:[%s3321_s2] ss:$0 sm:$0xff] }
 0x2a3   : > { %v1456_v36 = vor.u32 %v1454_v43, %v1453_v61  ;;  %v1628_v9 = vsel %vm529_vm10, %v1626_v29, %v1627_v3  ;;  %v1576_v39 = vrot.slane %v1574_v5, 1  ;;  %v1457_v18 = vrot.slane %v1453_v61, 4 }
 0x2a4   : > { %v1461_v10 = vrot.slane %v1459_v4, 7  ;;  %2296 = vmatmul.mubr.bf16.vlgmr.msra.gmra.mrb[16].mxu1 %v1628_v9  ;;  %v1511_v11 = vld [vmem:[#allocation2 + $0x18] sm:$0xf] }
 0x2a5   : > { %v1501_v13 = vsel %vm2925_vm8, %v1456_v36, %v1500_v7  ;;  %v1577_v37 = vor.u32 %v1576_v39, %v1572_v16  ;;  %v1521_v63 = vld [vmem:[#allocation2 + $0x18] sm:$0xe] }
 0x2a6   : > { %v1512_v0 = vld [vmem:[#allocation2 + $0x1c] sm:$0xf]  ;;  %1502 = vst [vmem:[#allocation2 + $0x24] sm:$0xf] %v1501_v13  ;;  %v1464_v23 = vor.u32 %v1462_v12, %v1461_v10  ;;  %v1466_v24 = vrot.slane %v1461_v10, 4 }
 0x2a7   : > { %v2034_v25 = vcombine.low %v1511_v11, %v1512_v0  ;;  %v2421_v26 = vld [vmem:[#allocation2 + $0x20] ss:$0 sps:$4 sm:$0x11]   ;;  %v2042_v58 = vcombine.low %v1521_v63, %v1512_v0  ;;  %v1582_v57 = vsel %vm464_vm9, %v1577_v37, %v1581_v19 }
 0x2a8   : > { %v1465_v28 = vsel %vm2915_vm7, %v1457_v18, %v1464_v23  ;;  %v1505_v2 = vsel %vm2857_vm3, %v1466_v24, %v1504_v17  ;;  %v1630_v30 = vrot.slane %v2421_v26, 1  ;;  %1679 = vmatprep.mubr.bf16.mxu0 %v1582_v57  ;;  %v1591_v32 = vshll.u32 %v2421_v26, 16 }
 0x2a9   : > { %1503 = vst [vmem:[#allocation2 + $0x28] sm:$0xf] %v1465_v28  ;;  %1506 = vst [vmem:[#allocation2 + $0x2c] sm:$0x1] %v1505_v2  ;;  %v1629_v31 = vrot.slane %v2042_v58, 1  ;;  %v1586_v22 = vshll.u32 %v2034_v25, 16  ;;  %1680 = vmatmul.mubr.bf16.gmra.mrb[36].mxu0 %v2033_v1 }
 0x2aa   : > { %v1584_v20 = vshrl.u32 %v2034_v25, 16  ;;  %v1593_v62 = vrot.slane %v1591_v32, 1 }
 0x2ab   : > { %v1631_v15 = vsel %vm529_vm10, %v1629_v31, %v1630_v30  ;;  %v1588_v35 = vrot.slane %v1586_v22, 1 }
 0x2ac   : > { %2299 = vmatprep.mubr.bf16.mxu1 %v1631_v15 }
 0x2ad   : > { %v1589_v46 = vor.u32 %v1588_v35, %v1584_v20  ;;  %v1513_v51 = vld [vmem:[#allocation2 + $0x24] sm:$0xf] }
 0x2ae   : > { %v1522_v40 = vld [vmem:[#allocation2 + $0x24] sm:$0xe] }
 0x2af   : > { %v1594_v14 = vsel %vm464_vm9, %v1589_v46, %v1593_v62 }
 0x2b0   : > { %1687 = vmatprep.mubr.bf16.mxu0 %v1594_v14  ;;  %v1514_v38 = vld [vmem:[#allocation2 + $0x28] sm:$0xf]  ;;  %v2424_v6 = vld [vmem:[#allocation2 + $0x2c] ss:$0 sps:$4 sm:$0x11]  }
 0x2b1   : > { %v2035_v41 = vcombine.low %v1513_v51, %v1514_v38  ;;  %v2043_v42 = vcombine.low %v1522_v40, %v1514_v38  ;;  %1688 = vmatmul.mubr.bf16.gmra.mrb[40].mxu0 %v2034_v25  ;;  %v1633_v44 = vrot.slane %v2424_v6, 1  ;;  %v1603_v47 = vshll.u32 %v2424_v6, 16 }
 0x2b3   : > { %v1632_v27 = vrot.slane %v2043_v42, 1  ;;  %v1598_v45 = vshll.u32 %v2035_v41, 16  ;;  %v1596_v48 = vshrl.u32 %v2035_v41, 16  ;;  %v1605_v52 = vrot.slane %v1603_v47, 1 }
 0x2b5   : > { %v1634_v21 = vsel %vm529_vm10, %v1632_v27, %v1633_v44  ;;  %v1600_v49 = vrot.slane %v1598_v45, 1 }
 0x2b6   : > { %2300 = vmatmul.mubr.bf16.gmra.mrb[20].mxu1 %v1634_v21 }
 0x2b7   : > { %v1601_v50 = vor.u32 %v1600_v49, %v1596_v48 }
 0x2b9   : > { %v1606_v53 = vsel %vm464_vm9, %v1601_v50, %v1605_v52 }
 0x2ba   : > { %1695 = vmatprep.mubr.bf16.mxu0 %v1606_v53 }
 0x2bb   : > { %1696 = vmatmul.mubr.bf16.gmra.mrb[44].mxu0 %v2035_v41 }
 0x374   : > { %v2195_v54 = vpop.f32.mrb[32].mxu0 }
 0x375   : > { %v2196_v33 = vpop.f32.mrb[33].mxu0 }
 0x376   : > { %v2197_v8 = vadd.f32 %v2196_v33, %v2195_v54  ;;  %v2198_v55 = vpop.f32.mrb[34].mxu0 }
 0x377   : > { %v2199_v56 = vpop.f32.mrb[35].mxu0  ;;  %v2297_v1 = vpop.f32.mrb[16].mxu1 }
 0x378   : > { %v2200_v59 = vadd.f32 %v2199_v56, %v2198_v55  ;;  %v1674_v61 = vadd.f32 %v3222_v60, %v2197_v8  ;;  %v1738_v43 = vpop.f32.mrb[17].mxu1 }
 0x379   : > { %v2298_v3 = vpop.f32.mrb[18].mxu1 }
 0x37a   : > { %v1739_v29 = vadd.f32 %v1738_v43, %v1674_v61  ;;  %v1677_v4 = vadd.f32 %v3222_v60, %v2200_v59  ;;  %v1741_v5 = vpop.f32.mrb[19].mxu1 }
 0x37c   : > { %v1777_v34 = vmul.f32 %v1739_v29, %v1739_v29  ;;  %v1742_v36 = vadd.f32 %v1741_v5, %v1677_v4  ;;  %v2201_v10 = vpop.f32.mrb[36].mxu0  ;;  %v1769_v54 = vmul.f32 0.5, %v1739_v29 }
 0x37d   : > { %v2202_v12 = vpop.f32.mrb[37].mxu0 }
 0x37e   : > { %v1785_v7 = vmul.f32 %v1777_v34, %v1739_v29  ;;  %v1778_v9 = vmul.f32 %v1742_v36, %v1742_v36  ;;  %v2203_v11 = vadd.f32 %v2202_v12, %v2201_v10  ;;  %v2204_v18 = vpop.f32.mrb[38].mxu0 }
 0x37f   : > { %v2205_v13 = vpop.f32.mrb[39].mxu0 }
 0x380   : > { %v1793_v16 = vmul.f32 0.044715, %v1785_v7  ;;  %v1786_v39 = vmul.f32 %v1778_v9, %v1742_v36  ;;  %v1682_v23 = vadd.f32 %v3222_v60, %v2203_v11  ;;  %v2206_v24 = vadd.f32 %v2205_v13, %v2204_v18 }
 0x382   : > { %v1801_v19 = vadd.f32 %v1793_v16, %v1739_v29  ;;  %v1794_v0 = vmul.f32 0.044715, %v1786_v39  ;;  %v3227_v25 = vadd.f32 %v2297_v1, %v1682_v23  ;;  %v1685_v26 = vadd.f32 %v3222_v60, %v2206_v24 }
 0x383   : > { %v1770_v1 = vmul.f32 0.5, %v1742_v36 }
 0x384   : > { %v1809_v37 = vmul.f32 0.7978846, %v1801_v19  ;;  %v1802_v63 = vadd.f32 %v1794_v0, %v1742_v36  ;;  %v1779_v58 = vmul.f32 %v3227_v25, %v3227_v25  ;;  %v2207_v28 = vpop.f32.mrb[40].mxu0  ;;  %v3232_v2 = vadd.f32 %v2298_v3, %v1685_v26 }
 0x385   : > { %v2208_v57 = vpop.f32.mrb[41].mxu0  ;;  %v1771_v24 = vmul.f32 0.5, %v3227_v25 }
 0x386   : > { %2458 = vtanh.f32 %v1809_v37  ;;  %v1810_v17 = vmul.f32 0.7978846, %v1802_v63  ;;  %v1787_v30 = vmul.f32 %v1779_v58, %v3227_v25  ;;  %v2209_v31 = vadd.f32 %v2208_v57, %v2207_v28  ;;  %v2210_v22 = vpop.f32.mrb[42].mxu0 }
 0x387   : > { %v1780_v32 = vmul.f32 %v3232_v2, %v3232_v2  ;;  %v2211_v15 = vpop.f32.mrb[43].mxu0 }
 0x388   : > { %2460 = vtanh.f32 %v1810_v17  ;;  %v1795_v20 = vmul.f32 0.044715, %v1787_v30  ;;  %v2212_v35 = vadd.f32 %v2211_v15, %v2210_v22  ;;  %v1690_v62 = vadd.f32 %v3222_v60, %v2209_v31 }
 0x389   : > { %v2301_v46 = vpop.f32.mrb[20].mxu1  ;;  %v1788_v14 = vmul.f32 %v1780_v32, %v3232_v2 }
 0x38a   : > { %v1754_v51 = vpop.f32.mrb[21].mxu1  ;;  %v1803_v38 = vadd.f32 %v1795_v20, %v3227_v25  ;;  %v1693_v6 = vadd.f32 %v3222_v60, %v2212_v35 }
 0x38b   : > { %v3240_v40 = vadd.f32 %v1754_v51, %v1690_v62  ;;  %v2302_v41 = vpop.f32.mrb[22].mxu1  ;;  %v1796_v42 = vmul.f32 0.044715, %v1788_v14 }
 0x38c   : > { %v1757_v27 = vpop.f32.mrb[23].mxu1  ;;  %v1811_v44 = vmul.f32 0.7978846, %v1803_v38 }
 0x38d   : > { %v1781_v45 = vmul.f32 %v3240_v40, %v3240_v40  ;;  %v3245_v47 = vadd.f32 %v1757_v27, %v1693_v6  ;;  %v1804_v21 = vadd.f32 %v1796_v42, %v3232_v2  ;;  %v1773_v20 = vmul.f32 0.5, %v3240_v40 }
 0x38e   : > { %v2213_v48 = vpop.f32.mrb[44].mxu0  ;;  %2462 = vtanh.f32 %v1811_v44 }
 0x38f   : > { %v1789_v50 = vmul.f32 %v1781_v45, %v3240_v40  ;;  %v1782_v52 = vmul.f32 %v3245_v47, %v3245_v47  ;;  %v2214_v53 = vpop.f32.mrb[45].mxu0  ;;  %v1812_v8 = vmul.f32 0.7978846, %v1804_v21  ;;  %v1774_v62 = vmul.f32 0.5, %v3245_v47 }
 0x390   : > { %v2459_v49 = vpop.eup %2458  ;;  %v2215_v55 = vadd.f32 %v2214_v53, %v2213_v48  ;;  %v2216_v56 = vpop.f32.mrb[46].mxu0 }
 0x391   : > { %v1825_v33 = vadd.f32 1.0, %v2459_v49  ;;  %v1797_v61 = vmul.f32 0.044715, %v1789_v50  ;;  %v1790_v43 = vmul.f32 %v1782_v52, %v3245_v47  ;;  %v2217_v3 = vpop.f32.mrb[47].mxu0  ;;  %2464 = vtanh.f32 %v1812_v8 }
 0x392   : > { %v2461_v59 = vpop.eup %2460  ;;  %v1698_v34 = vadd.f32 %v3222_v60, %v2215_v55  ;;  %v2218_v9 = vadd.f32 %v2217_v3, %v2216_v56 }
 0x393   : > { %v1833_v4 = vmul.f32 %v1825_v33, %v1769_v54  ;;  %v1826_v5 = vadd.f32 1.0, %v2461_v59  ;;  %v1805_v7 = vadd.f32 %v1797_v61, %v3240_v40  ;;  %v1798_v29 = vmul.f32 0.044715, %v1790_v43 }
 0x394   : > { %v1763_v12 = vadd.f32 %v2301_v46, %v1698_v34  ;;  %v1701_v39 = vadd.f32 %v3222_v60, %v2218_v9  ;;  %v1772_v60 = vmul.f32 0.5, %v3232_v2 }
 0x395   : > { %2044 = vst [vmem:[%s3073_s9 + $0x20] sm:$0xff] %v1833_v4  ;;  %v1834_v10 = vmul.f32 %v1826_v5, %v1770_v1  ;;  %v1813_v16 = vmul.f32 0.7978846, %v1805_v7  ;;  %v1806_v36 = vadd.f32 %v1798_v29, %v3245_v47 }
 0x396   : > { %v1783_v11 = vmul.f32 %v1763_v12, %v1763_v12  ;;  %v1766_v13 = vadd.f32 %v2302_v41, %v1701_v39  ;;  %v1775_v41 = vmul.f32 0.5, %v1763_v12 }
 0x397   : > { %2045 = vst [vmem:[%s3073_s9 + $0x28] sm:$0xff] %v1834_v10  ;;  %2466 = vtanh.f32 %v1813_v16  ;;  %v1814_v18 = vmul.f32 0.7978846, %v1806_v36 }
 0x398   : > { %v1791_v19 = vmul.f32 %v1783_v11, %v1763_v12  ;;  %v2463_v0 = vpop.eup %2462  ;;  %v1784_v23 = vmul.f32 %v1766_v13, %v1766_v13  ;;  %v1776_v27 = vmul.f32 0.5, %v1766_v13 }
 0x399   : > { %2468 = vtanh.f32 %v1814_v18  ;;  %v1827_v37 = vadd.f32 1.0, %v2463_v0 }
 0x39a   : > { %v1799_v63 = vmul.f32 0.044715, %v1791_v19  ;;  %v1792_v26 = vmul.f32 %v1784_v23, %v1766_v13 }
 0x39b   : > { %v2465_v17 = vpop.eup %2464  ;;  %v1835_v58 = vmul.f32 %v1827_v37, %v1771_v24 }
 0x39c   : > { %v1807_v28 = vadd.f32 %v1799_v63, %v1763_v12  ;;  %v1828_v57 = vadd.f32 1.0, %v2465_v17  ;;  %v1800_v30 = vmul.f32 0.044715, %v1792_v26 }
 0x39d   : > { %2046 = vst [vmem:[%s3073_s9 + $0x50] sm:$0xff] %v1835_v58 }
 0x39e   : > { %v1815_v31 = vmul.f32 0.7978846, %v1807_v28  ;;  %v1836_v22 = vmul.f32 %v1828_v57, %v1772_v60  ;;  %v1808_v32 = vadd.f32 %v1800_v30, %v1766_v13 }
 0x3a0   : > { %2470 = vtanh.f32 %v1815_v31  ;;  %2047 = vst [vmem:[%s3073_s9 + $0x58] sm:$0xff] %v1836_v22  ;;  %v1816_v25 = vmul.f32 0.7978846, %v1808_v32 }
 0x3a1   : > { %v2467_v15 = vpop.eup %2466 }
 0x3a2   : > { %v1829_v35 = vadd.f32 1.0, %v2467_v15  ;;  %2472 = vtanh.f32 %v1816_v25 }
 0x3a3   : > { %v2469_v46 = vpop.eup %2468 }
 0x3a4   : > { %v1837_v2 = vmul.f32 %v1829_v35, %v1773_v20  ;;  %v1830_v14 = vadd.f32 1.0, %v2469_v46 }
 0x3a6   : > { %2048 = vst [vmem:[%s3073_s9 + $0x80] sm:$0xff] %v1837_v2  ;;  %v1838_v51 = vmul.f32 %v1830_v14, %v1774_v62 }
 0x3a8   : > { %2049 = vst [vmem:[%s3073_s9 + $0x88] sm:$0xff] %v1838_v51 }
 0x3aa   : > { %v2471_v38 = vpop.eup %2470 }
 0x3ab   : > { %v1831_v6 = vadd.f32 1.0, %v2471_v38 }
 0x3ac   : > { %v2473_v40 = vpop.eup %2472 }
 0x3ad   : > { %v1839_v42 = vmul.f32 %v1831_v6, %v1775_v41  ;;  %v1832_v44 = vadd.f32 1.0, %v2473_v40 }
 0x3af   : > { %2050 = vst [vmem:[%s3073_s9 + $0xb0] sm:$0xff] %v1839_v42  ;;  %v1840_v45 = vmul.f32 %v1832_v44, %v1776_v27 }
 0x3b1   : > { %2051 = vst [vmem:[%s3073_s9 + $0xb8] sm:$0xff] %v1840_v45 }
 0x3b2   : > { %2569 = shalt.err (!%p2566_p7)
}
 0x3b3   : > { %s2570_s10 = scalar_lea.hbm %s3272_s23, 3072  ;;  %s2574_s20 = scalar_lea.hbm %s3322_s3, 6144 }
 0x3b4   : > { %p2571_p9 = scmp.ne.s32.totalorder %s3272_s23, %s2570_s10  ;;  %p2575_p5 = scmp.lt.u32.totalorder %s3272_s23, %s3322_s3 }
 0x3b5   : > { %p2576_p11 = scmp.lt.u32.totalorder %s2574_s20, %s2570_s10  ;;  %p2578_p4 = scmp.lt.u32.totalorder %s2570_s10, %s3272_s23 }
 0x3b6   : > { %p2572_p1 = pnand %p2571_p9, %p2749_p12 }
 0x3b7   : > { %p2577_p2 = por %p2576_p11, %p2575_p5 }
 0x3b8   : > { %p2573_p0 = pneg %p2572_p1 }
 0x3b9   : > { %p2579_p6 = por %p2578_p4, %p2577_p2 }
 0x3bb   : > { %p2580_p8 = pnand %p2579_p6, %p2573_p0 }
 0x3bd   : > { %2583 = shalt.err (!%p2580_p8)
}
 0x3be   : > { %s2633_s4 = smov 128   ;;  %s2634_s25 = smov 8  }
 0x3bf   : > { %2311 = dma.vmem_to_hbm [thread:$0]  (%p2749_p12), %s3274_s5, 3072, %s3272_s23, %s1851_s29, %s2633_s4, %s2633_s4, %s2634_s25  }
 0x3c0 PF: > { %s1880_s26 = sand.u32 1, %s2614_s12   ;;  %p3345_p10 = scmp.ne.s32.totalorder %s3327_s19, 0 }
 0x3c1   : > { %p3346_p13 = scmp.ge.s32.totalorder %s2626_s15, 2  ;;  %s1881_s27 = scalar_lea.sflag [#allocation5], %s1880_s26 }
 0x3c3   : > { %p2322_p3 = pnand %p3346_p13, %p3345_p10 }
 0x3c5   : > { %2609 = dma.done.wait (!%p2322_p3), %s1881_s27, 3072  }
 0x3c6   : > { %2611 = vsyncadd (!%p2322_p3), %s1881_s27, 4294964224  ;;  %p17_p7 = scmp.ge.s32.totalorder %s2711_s24, 4   ;;  %s3347_s12 = smov %s2618_s13 }
 0x3c7   : > { %s3348_s13 = smov %s2622_s14  ;;  %s3349_s14 = smov %s2745_s17 }
 0x3c8   : > { %s3350_s15 = smov %s2711_s24  ;;  %19 = sbr.rel (!%p17_p7) target bundleno = 6 (0x6), region = 83 }
 0x3cf   :  { %1886 = vsyncpa [#allocation4], 1 }
 0x3d0   :  { %1888 = vsyncpa [#allocation4 + $0x1], 1 }
 0x3d1   :  { %1889 = vsyncpa [#allocation7], 1 }
 0x3d2   :  { %1890 = vsyncpa [#allocation5], 1 }
 0x3d3   :  { %1892 = vsyncpa [#allocation5 + $0x1], 1 }

</bundles_post_ra>
